<compile_context>
chip_gen: v7x
topology: tpu7x:2x2x1
jax: 0.10.0
libtpu: 0.0.40
codegen_flags: <defaults>
</compile_context>

<pallas_src>
import functools

import jax
import jax.numpy as jnp
from jax import lax
from jax.experimental import pallas as pl
from jax.experimental.pallas import tpu as pltpu

K = 3  # conv kernel size (kernel_sizes=(3,))


def _roll_lanes(x, shift):
    """Circular shift along the last (lane) axis: result[..., i] = x[..., i - shift].

    Uses pltpu.roll (a single XLU rotate in the vector-extended slot, off the
    VPU critical path) whenever the lane extent is vreg-aligned (multiple of
    128 -- guaranteed for production-sized, lane-dense tiles).  Falls back to
    two static slices + a concat for unaligned widths (correct, just slower).
    """
    size = x.shape[-1]
    s = shift % size
    if s == 0:
        return x
    if size % 128 == 0:
        return pltpu.roll(x, s, axis=x.ndim - 1)
    lead = lax.slice_in_dim(x, size - s, size, axis=x.ndim - 1)
    tail = lax.slice_in_dim(x, 0, size - s, axis=x.ndim - 1)
    return lax.concatenate([lead, tail], dimension=x.ndim - 1)


def _fused_tile_kernel(w_ref, x_ref, halo_ref, col_ref, idx_ref, coef_ref, *refs,
                       width, use_mask):
    """One row-tile of: circular 3x3 conv + tanh [+ mask] + agent gather + rescale.

    w_ref    : (C_act, K_pad)        f32  padded im2col weight, cols ordered (kh, kw, cin)
    x_ref    : (C_in, tile)          f32  current flat row-tile of the field
    halo_ref : (1, 2*C_in, W)        f32  [row above tile ; row below tile] (circular)
    col_ref  : (1, tile + 2W)        i32  column index of every extended-buffer lane
    idx_ref  : (1, N_pad)            i32  flat agent positions (r*W + c), -1 padded
    coef_ref : (C_act, 1)            f32  action_coefs
    [mask_ref: (1, tile)             f32  dropout-mask tile]   (only if use_mask)
    sense_ref: (C_act, tile)         f32  tanh(conv(x)) [* mask] for this tile
    agent_ref: (1, C_act, N_pad)     f32  this tile's (already rescaled) gather partial
    """
    if use_mask:
        mask_ref, sense_ref, agent_ref = refs
    else:
        sense_ref, agent_ref = refs

    c_in, tile = x_ref.shape
    c_act, k_pad = w_ref.shape
    n_pad = idx_ref.shape[1]
    wd = width

    halo = halo_ref[0]                       # (2*C_in, W)
    prev_row = halo[:c_in]                   # row above the tile (circular)
    next_row = halo[c_in:]                   # row below the tile (circular)

    # Extended flat tile: one circular halo row on each side.  Every tap of
    # the 3x3 stencil then becomes a STATIC lane slice of this buffer -- no
    # per-tap wrap handling and no cross-tile reads.
    x_ext = jnp.concatenate([prev_row, x_ref[...], next_row], axis=1)  # (C_in, tile+2W)

    # W-circular left / right neighbours: one XLU roll per branch plus a
    # single boundary fix-up select at the first / last column of every row
    # (2 full-size selects total; the column pattern is a tiny precomputed
    # input, no field-sized int32 iota or modulo).
    col = col_ref[...]                       # (1, tile + 2W)
    first_col = col == 0
    last_col = col == (wd - 1)
    xl = jnp.where(first_col, _roll_lanes(x_ext, 1 - wd), _roll_lanes(x_ext, 1))
    xr = jnp.where(last_col,  _roll_lanes(x_ext, wd - 1), _roll_lanes(x_ext, -1))

    # im2col patch: rows ordered (kh, kw, cin), zero-padded to a sublane
    # multiple, so ONE MXU contraction replaces 9 K=3 dots + 8 VPU accumulates.
    stacked = jnp.concatenate([xl, x_ext, xr], axis=0)       # (3*C_in, tile+2W), kw-major
    taps = [lax.slice_in_dim(stacked, kh * wd, kh * wd + tile, axis=1)
            for kh in range(K)]                              # each (3*C_in, tile)
    pad_rows = k_pad - K * K * c_in
    if pad_rows:
        taps.append(jnp.zeros((pad_rows, tile), jnp.float32))
    patch = jnp.concatenate(taps, axis=0)                    # (K_pad, tile)

    act = jnp.tanh(jnp.dot(w_ref[...], patch,
                           preferred_element_type=jnp.float32))  # (C_act, tile)
    if use_mask:
        act = act * mask_ref[...]
    sense_ref[...] = act                                     # lane-dense store

    # Per-agent gather restricted to THIS tile: the one-hot is (tile, N_pad),
    # never (HW, N).  Agents outside the tile contribute exact zeros; the
    # wrapper sums the per-tile partials, so the grid axis stays parallel.
    tile_start = pl.program_id(0) * tile
    local_idx = idx_ref[...] - tile_start                    # (1, N_pad)
    onehot = (lax.broadcasted_iota(jnp.int32, (tile, n_pad), 0)
              == local_idx).astype(jnp.float32)              # (tile, N_pad)
    per_agent = jnp.dot(act, onehot, preferred_element_type=jnp.float32)
    agent_ref[0] = per_agent * coef_ref[...]


def neural_automata_agent_forward(weight, medium, agent_rc, *,
                                  scale=0.1, deposit=1.0,
                                  p_agent_dropout=0.0, dropout_key=None,
                                  rows_per_tile=None):
    """NeuralAutomataAgent.forward (minus xarray / env plumbing).

    weight   : (C_act, C_obs, K, K) Conv2d weight (OIHW)
    medium   : (C_obs, H, W) float field (xarray .values)
    agent_rc : (N_agents, 2) int32 (row, col) agent positions
    returns  : sense_output (1, C_act, H, W), per_agent_action (C_act, N_agents)
    """
    c_obs, h, w = medium.shape
    c_act = weight.shape[0]
    hw = h * w
    n_agents = agent_rc.shape[0]

    if c_act != 3:
        # The module hard-codes action_coefs = [scale, scale, deposit] (3 rows).
        raise ValueError(f"NeuralAutomataAgent assumes 3 action channels, got {c_act}")

    # ---- tile selection (row-aligned so halos are whole rows) -------------
    if rows_per_tile is None:
        # Largest row-block whose flat tile is lane-aligned (multiple of 128)
        # and stays within a modest per-tile lane budget.  16K lanes/channel
        # (~64 KiB f32) keeps the ~5 live tile-sized f32 temporaries + the
        # (tile, 128) one-hot comfortably inside scoped VMEM on every
        # generation (v5e 16 MiB, v6e/v7x 32 MiB default) with double
        # buffering; halve the budget if you grow it near v7x's 64 MiB.
        candidates = [r for r in range(1, h + 1)
                      if h % r == 0 and (r * w) % 128 == 0 and r * w <= 16384]
        rows_per_tile = max(candidates) if candidates else h
    if h % rows_per_tile != 0:
        raise ValueError("rows_per_tile must divide H")
    tile = rows_per_tile * w
    if tile % 128 != 0 and tile != hw:
        raise ValueError("tile lane count must be a multiple of 128 "
                         "(or a single full-field tile)")
    n_tiles = h // rows_per_tile
    ext_len = tile + 2 * w

    # ---- inputs (layout plumbing only, no compute) ------------------------
    x3 = medium.astype(jnp.float32)                       # (C_obs, H, W)
    x_flat = x3.reshape(c_obs, hw)                        # lane-dense flat field

    # Padded im2col weight: columns ordered (kh, kw, cin), zero-padded to a
    # sublane multiple so the in-kernel contraction is a single K=32 dot.
    k_taps = K * K * c_obs
    k_pad = ((k_taps + 7) // 8) * 8
    w_flat = jnp.transpose(weight.astype(jnp.float32), (0, 2, 3, 1)).reshape(c_act, k_taps)
    w_pad = jnp.pad(w_flat, ((0, 0), (0, k_pad - k_taps)))

    # Circular halo rows per tile: row above / below each row-block.
    prev_idx = [(t * rows_per_tile - 1) % h for t in range(n_tiles)]
    next_idx = [((t + 1) * rows_per_tile) % h for t in range(n_tiles)]
    prev_rows = x3[:, jnp.array(prev_idx, jnp.int32), :]   # (C_obs, n_tiles, W)
    next_rows = x3[:, jnp.array(next_idx, jnp.int32), :]
    halos = jnp.transpose(jnp.concatenate([prev_rows, next_rows], axis=0),
                          (1, 0, 2))                       # (n_tiles, 2*C_obs, W)

    # Column index of every lane of the extended buffer (same for all tiles):
    # replaces the in-kernel field-sized iota + int32 modulo.
    col_ext = jnp.tile(jnp.arange(w, dtype=jnp.int32),
                       rows_per_tile + 2).reshape(1, ext_len)

    # Flat agent positions, clamped (defensive vs OOB) and padded to a lane
    # multiple with -1 (never matches any position; sliced off afterwards).
    n_pad = ((n_agents + 127) // 128) * 128
    flat_idx = jnp.clip(agent_rc[:, 0].astype(jnp.int32) * w
                        + agent_rc[:, 1].astype(jnp.int32), 0, hw - 1)
    idx_pad = jnp.full((1, n_pad), -1, jnp.int32).at[0, :n_agents].set(flat_idx)

    action_coefs = jnp.array([scale, scale, deposit], jnp.float32).reshape(c_act, 1)

    use_mask = p_agent_dropout > 0.0
    inputs = [w_pad, x_flat, halos, col_ext, idx_pad, action_coefs]
    in_specs = [
        pl.BlockSpec((c_act, k_pad), lambda t: (0, 0)),
        pl.BlockSpec((c_obs, tile), lambda t: (0, t)),
        pl.BlockSpec((1, 2 * c_obs, w), lambda t: (t, 0, 0)),
        pl.BlockSpec((1, ext_len), lambda t: (0, 0)),
        pl.BlockSpec((1, n_pad), lambda t: (0, 0)),
        pl.BlockSpec((c_act, 1), lambda t: (0, 0)),
    ]
    if use_mask:
        if dropout_key is None:
            raise ValueError("dropout_key required when p_agent_dropout > 0")
        # TODO(synk): torch.nn.Dropout uses torch's RNG stream; semantics
        # (Bernoulli keep-mask scaled by 1/(1-p)) are reproduced with JAX RNG.
        keep = jax.random.bernoulli(dropout_key, 1.0 - p_agent_dropout, (h, w))
        mask = keep.astype(jnp.float32) / (1.0 - p_agent_dropout)
        inputs.append(mask.reshape(1, hw))
        in_specs.append(pl.BlockSpec((1, tile), lambda t: (0, t)))

    kernel = functools.partial(_fused_tile_kernel, width=w, use_mask=use_mask)

    sense_flat, agent_partial = pl.pallas_call(
        kernel,
        grid=(n_tiles,),
        out_shape=(jax.ShapeDtypeStruct((c_act, hw), jnp.float32),
                   jax.ShapeDtypeStruct((n_tiles, c_act, n_pad), jnp.float32)),
        in_specs=in_specs,
        out_specs=(pl.BlockSpec((c_act, tile), lambda t: (0, t)),
                   pl.BlockSpec((1, c_act, n_pad), lambda t: (t, 0, 0))),
        compiler_params=pltpu.CompilerParams(
            dimension_semantics=("parallel",),
            vmem_limit_bytes=64 * 1024 * 1024),
    )(*inputs)

    # TODO(synk): AgentIndexer's xarray nearest-coordinate lookup is reproduced
    # as an exact integer (row, col) gather.
    sense = sense_flat.reshape(1, c_act, h, w)
    per_agent = agent_partial.sum(axis=0)[:, :n_agents]   # tiny (n_tiles,3,128) reduce
    return sense, per_agent


def _reference_forward(weight, medium, agent_rc, *, scale, deposit):
    """Independent pure-JAX reference (circular conv + tanh + gather + rescale)."""
    xpad = jnp.pad(medium[None].astype(jnp.float32),
                   ((0, 0), (0, 0), (1, 1), (1, 1)), mode="wrap")
    y = jax.lax.conv_general_dilated(
        xpad, weight.astype(jnp.float32), window_strides=(1, 1), padding="VALID",
        dimension_numbers=("NCHW", "OIHW", "NCHW"),
        precision=jax.lax.Precision.HIGHEST)
    sense = jnp.tanh(y)                                     # (1, C_act, H, W)
    field = sense[0]
    per_agent = field[:, agent_rc[:, 0], agent_rc[:, 1]]    # (C_act, N)
    coefs = jnp.array([scale, scale, deposit], jnp.float32).reshape(-1, 1)
    return sense, per_agent * coefs


if __name__ == "__main__":
    # Small deterministic setup: 3 obs / 3 action channels, 16 x 128 field
    # (W = 128 keeps every lane op vreg-aligned; H*W = 2048), 8 agents.
    # rows_per_tile=8 -> 2 row-tiles, so the circular halo path is exercised.
    C_OBS, C_ACT, H, W = 3, 3, 16, 128
    N_AGENTS = 8

    key = jax.random.PRNGKey(0)
    k_w, k_m, k_r, k_c = jax.random.split(key, 4)

    # xavier_uniform-style deterministic init for the Conv2d weight (OIHW).
    fan_in, fan_out = C_OBS * K * K, C_ACT * K * K
    bound = (6.0 / (fan_in + fan_out)) ** 0.5
    weight = jax.random.uniform(k_w, (C_ACT, C_OBS, K, K), jnp.float32,
                                minval=-bound, maxval=bound)

    medium = jax.random.uniform(k_m, (C_OBS, H, W), jnp.float32)
    agent_rc = jnp.stack(
        [jax.random.randint(k_r, (N_AGENTS,), 0, H, dtype=jnp.int32),
         jax.random.randint(k_c, (N_AGENTS,), 0, W, dtype=jnp.int32)], axis=1)

    sense, per_agent = neural_automata_agent_forward(
        weight, medium, agent_rc, scale=0.1, deposit=1.0,
        p_agent_dropout=0.0, rows_per_tile=8)
    sense = jax.block_until_ready(sense)
    per_agent = jax.block_until_ready(per_agent)

    ref_sense, ref_per_agent = _reference_forward(
        weight, medium, agent_rc, scale=0.1, deposit=1.0)

    assert sense.shape == (1, C_ACT, H, W)
    assert per_agent.shape == (C_ACT, N_AGENTS)
    # f32 MXU (multi-pass) + EUP tanh vs the HIGHEST-precision XLA reference
    # agree to ~1e-6; 1e-4 leaves margin while still catching real bugs.
    assert jnp.max(jnp.abs(sense - ref_sense)) < 1e-4, "sense mismatch vs reference"
    assert jnp.max(jnp.abs(per_agent - ref_per_agent)) < 1e-4, "action mismatch vs reference"

    print("KERNEL_OK")
</pallas_src>

<mosaic_0001>
module attributes {stable_mosaic.version = 11 : i64} {
  func.func @_fused_tile_kernel(%arg0: i32, %arg1: memref<3x32xf32, #tpu.memory_space<vmem>>, %arg2: memref<3x1024xf32, #tpu.memory_space<vmem>>, %arg3: memref<1x6x128xf32, #tpu.memory_space<vmem>>, %arg4: memref<1x1280xi32, #tpu.memory_space<vmem>>, %arg5: memref<1x128xi32, #tpu.memory_space<vmem>>, %arg6: memref<3x1xf32, #tpu.memory_space<vmem>>, %arg7: memref<3x1024xf32, #tpu.memory_space<vmem>>, %arg8: memref<1x3x128xf32, #tpu.memory_space<vmem>>) attributes {dimension_semantics = [#tpu.dimension_semantics<parallel>], iteration_bounds = array<i64: 2>, scalar_prefetch = 0 : i64, scratch_operands = 0 : i64, tpu.core_type = #tpu.core_type<tc>, window_params = [{pipeline_mode = #tpu.pipeline_mode<synchronous>, transform_indices = @transform_0, window_bounds = array<i64: 3, 32>}, {transform_indices = @transform_1, window_bounds = array<i64: 3, 1024>}, {transform_indices = @transform_2, window_bounds = array<i64: 1, 6, 128>}, {pipeline_mode = #tpu.pipeline_mode<synchronous>, transform_indices = @transform_3, window_bounds = array<i64: 1, 1280>}, {pipeline_mode = #tpu.pipeline_mode<synchronous>, transform_indices = @transform_4, window_bounds = array<i64: 1, 128>}, {pipeline_mode = #tpu.pipeline_mode<synchronous>, transform_indices = @transform_5, window_bounds = array<i64: 3, 1>}, {transform_indices = @transform_6, window_bounds = array<i64: 3, 1024>}, {transform_indices = @transform_7, window_bounds = array<i64: 1, 3, 128>}]} {
    %c0 = arith.constant 0 : index
    %c0_0 = arith.constant 0 : index
    %c0_1 = arith.constant 0 : index
    %0 = vector.load %arg3[%c0, %c0_0, %c0_1] : memref<1x6x128xf32, #tpu.memory_space<vmem>>, vector<1x6x128xf32>
    %1 = vector.shape_cast %0 : vector<1x6x128xf32> to vector<6x128xf32>
    %2 = vector.extract_strided_slice %1 {offsets = [0, 0], sizes = [3, 128], strides = [1, 1]} : vector<6x128xf32> to vector<3x128xf32>
    %3 = vector.extract_strided_slice %1 {offsets = [3, 0], sizes = [3, 128], strides = [1, 1]} : vector<6x128xf32> to vector<3x128xf32>
    %c0_2 = arith.constant 0 : index
    %c0_3 = arith.constant 0 : index
    %4 = vector.load %arg2[%c0_2, %c0_3] : memref<3x1024xf32, #tpu.memory_space<vmem>>, vector<3x1024xf32>
    %5 = tpu.concatenate %2, %4, %3 in 1 : vector<3x128xf32>, vector<3x1024xf32>, vector<3x128xf32> -> vector<3x1280xf32>
    %c0_4 = arith.constant 0 : index
    %c0_5 = arith.constant 0 : index
    %6 = vector.load %arg4[%c0_4, %c0_5] : memref<1x1280xi32, #tpu.memory_space<vmem>>, vector<1x1280xi32>
    %c0_i32 = arith.constant 0 : i32
    %7 = vector.broadcast %c0_i32 : i32 to vector<1x1280xi32>
    %8 = arith.cmpi eq, %6, %7 : vector<1x1280xi32>
    %c127_i32 = arith.constant 127 : i32
    %9 = vector.broadcast %c127_i32 : i32 to vector<1x1280xi32>
    %10 = arith.cmpi eq, %6, %9 : vector<1x1280xi32>
    %c1153_i32 = arith.constant 1153 : i32
    %11 = tpu.dynamic_rotate %5 by %c1153_i32 dim 1 : vector<3x1280xf32>, i32 -> vector<3x1280xf32>
    %c1_i32 = arith.constant 1 : i32
    %12 = tpu.dynamic_rotate %5 by %c1_i32 dim 1 : vector<3x1280xf32>, i32 -> vector<3x1280xf32>
    %13 = vector.shape_cast %8 : vector<1x1280xi1> to vector<1x1280xi1>
    %14 = vector.broadcast %13 : vector<1x1280xi1> to vector<3x1280xi1>
    %15 = arith.select %14, %11, %12 : vector<3x1280xi1>, vector<3x1280xf32>
    %c127_i32_6 = arith.constant 127 : i32
    %16 = tpu.dynamic_rotate %5 by %c127_i32_6 dim 1 : vector<3x1280xf32>, i32 -> vector<3x1280xf32>
    %c1279_i32 = arith.constant 1279 : i32
    %17 = tpu.dynamic_rotate %5 by %c1279_i32 dim 1 : vector<3x1280xf32>, i32 -> vector<3x1280xf32>
    %18 = vector.shape_cast %10 : vector<1x1280xi1> to vector<1x1280xi1>
    %19 = vector.broadcast %18 : vector<1x1280xi1> to vector<3x1280xi1>
    %20 = arith.select %19, %16, %17 : vector<3x1280xi1>, vector<3x1280xf32>
    %21 = tpu.concatenate %15, %5, %20 in 0 : vector<3x1280xf32>, vector<3x1280xf32>, vector<3x1280xf32> -> vector<9x1280xf32>
    %22 = vector.extract_strided_slice %21 {offsets = [0, 0], sizes = [9, 1024], strides = [1, 1]} : vector<9x1280xf32> to vector<9x1024xf32>
    %23 = vector.extract_strided_slice %21 {offsets = [0, 128], sizes = [9, 1024], strides = [1, 1]} : vector<9x1280xf32> to vector<9x1024xf32>
    %24 = vector.extract_strided_slice %21 {offsets = [0, 256], sizes = [9, 1024], strides = [1, 1]} : vector<9x1280xf32> to vector<9x1024xf32>
    %cst = arith.constant 0.000000e+00 : f32
    %25 = vector.broadcast %cst : f32 to vector<5x1024xf32>
    %26 = tpu.concatenate %22, %23, %24, %25 in 0 : vector<9x1024xf32>, vector<9x1024xf32>, vector<9x1024xf32>, vector<5x1024xf32> -> vector<32x1024xf32>
    %c0_7 = arith.constant 0 : index
    %c0_8 = arith.constant 0 : index
    %27 = vector.load %arg1[%c0_7, %c0_8] : memref<3x32xf32, #tpu.memory_space<vmem>>, vector<3x32xf32>
    %cst_9 = arith.constant dense<0.000000e+00> : vector<3x1024xf32>
    %28 = tpu.matmul %27, %26, %cst_9 {dimension_numbers = #tpu.dot_dimension_numbers<[1], [0], [0], [1], [0, 0, 1, 1], [], []>} : vector<3x32xf32>, vector<32x1024xf32>, vector<3x1024xf32> -> vector<3x1024xf32>
    %29 = math.tanh %28 : vector<3x1024xf32>
    %c0_10 = arith.constant 0 : index
    %c0_11 = arith.constant 0 : index
    %30 = vector.load %arg7[%c0_10, %c0_11] : memref<3x1024xf32, #tpu.memory_space<vmem>>, vector<3x1024xf32>
    tpu.vector_store %arg7[%c0_10, %c0_11], %29 {strides = array<i32>} : memref<3x1024xf32, #tpu.memory_space<vmem>>, vector<3x1024xf32>,
    %c1024_i32 = arith.constant 1024 : i32
    %31 = arith.muli %arg0, %c1024_i32 : i32
    %c0_12 = arith.constant 0 : index
    %c0_13 = arith.constant 0 : index
    %32 = vector.load %arg5[%c0_12, %c0_13] : memref<1x128xi32, #tpu.memory_space<vmem>>, vector<1x128xi32>
    %33 = vector.broadcast %31 : i32 to vector<1x128xi32>
    %34 = arith.subi %32, %33 : vector<1x128xi32>
    %35 = tpu.iota {dimensions = array<i32: 0>} : vector<1024x128xi32>
    %36 = vector.broadcast %34 : vector<1x128xi32> to vector<1024x128xi32>
    %37 = arith.cmpi eq, %35, %36 : vector<1024x128xi32>
    %38 = arith.extui %37 : vector<1024x128xi1> to vector<1024x128xi32>
    %39 = arith.sitofp %38 : vector<1024x128xi32> to vector<1024x128xf32>
    %cst_14 = arith.constant dense<0.000000e+00> : vector<3x128xf32>
    %40 = tpu.matmul %29, %39, %cst_14 {dimension_numbers = #tpu.dot_dimension_numbers<[1], [0], [0], [1], [0, 0, 1, 1], [], []>} : vector<3x1024xf32>, vector<1024x128xf32>, vector<3x128xf32> -> vector<3x128xf32>
    %c0_15 = arith.constant 0 : index
    %c0_16 = arith.constant 0 : index
    %41 = vector.load %arg6[%c0_15, %c0_16] : memref<3x1xf32, #tpu.memory_space<vmem>>, vector<3x1xf32>
    %42 = vector.broadcast %41 : vector<3x1xf32> to vector<3x128xf32>
    %43 = arith.mulf %40, %42 : vector<3x128xf32>
    %c0_17 = arith.constant 0 : index
    %c0_18 = arith.constant 0 : index
    %c0_19 = arith.constant 0 : index
    %44 = vector.load %arg8[%c0_17, %c0_18, %c0_19] : memref<1x3x128xf32, #tpu.memory_space<vmem>>, vector<1x3x128xf32>
    %45 = vector.shape_cast %44 : vector<1x3x128xf32> to vector<3x128xf32>
    %46 = vector.shape_cast %43 : vector<3x128xf32> to vector<1x3x128xf32>
    tpu.vector_store %arg8[%c0_17, %c0_18, %c0_19], %46 {strides = array<i32>} : memref<1x3x128xf32, #tpu.memory_space<vmem>>, vector<1x3x128xf32>,
    return
  }
  func.func @transform_0(%arg0: i32) -> (i32, i32) {
    %c0_i32 = arith.constant 0 : i32
    %c0_i32_0 = arith.constant 0 : i32
    %c0_i32_1 = arith.constant 0 : i32
    return %c0_i32, %c0_i32_0 : i32, i32
  }
  func.func @transform_1(%arg0: i32) -> (i32, i32) {
    %c0_i32 = arith.constant 0 : i32
    %c0_i32_0 = arith.constant 0 : i32
    return %c0_i32, %arg0 : i32, i32
  }
  func.func @transform_2(%arg0: i32) -> (i32, i32, i32) {
    %c0_i32 = arith.constant 0 : i32
    %c0_i32_0 = arith.constant 0 : i32
    %c0_i32_1 = arith.constant 0 : i32
    return %arg0, %c0_i32, %c0_i32_0 : i32, i32, i32
  }
  func.func @transform_3(%arg0: i32) -> (i32, i32) {
    %c0_i32 = arith.constant 0 : i32
    %c0_i32_0 = arith.constant 0 : i32
    %c0_i32_1 = arith.constant 0 : i32
    return %c0_i32, %c0_i32_0 : i32, i32
  }
  func.func @transform_4(%arg0: i32) -> (i32, i32) {
    %c0_i32 = arith.constant 0 : i32
    %c0_i32_0 = arith.constant 0 : i32
    %c0_i32_1 = arith.constant 0 : i32
    return %c0_i32, %c0_i32_0 : i32, i32
  }
  func.func @transform_5(%arg0: i32) -> (i32, i32) {
    %c0_i32 = arith.constant 0 : i32
    %c0_i32_0 = arith.constant 0 : i32
    %c0_i32_1 = arith.constant 0 : i32
    return %c0_i32, %c0_i32_0 : i32, i32
  }
  func.func @transform_6(%arg0: i32) -> (i32, i32) {
    %c0_i32 = arith.constant 0 : i32
    %c0_i32_0 = arith.constant 0 : i32
    return %c0_i32, %arg0 : i32, i32
  }
  func.func @transform_7(%arg0: i32) -> (i32, i32, i32) {
    %c0_i32 = arith.constant 0 : i32
    %c0_i32_0 = arith.constant 0 : i32
    %c0_i32_1 = arith.constant 0 : i32
    return %arg0, %c0_i32, %c0_i32_0 : i32, i32, i32
  }
}

</mosaic_0001>

<bundles_post_ra>
// kernel: tpu_custom_call.1
= control target key start
LH: loop header
LB: loop body
LE: loop exit
PB: predicated region body
PF: predicated region fallthrough
CT: control target
= control target key end

     0   :  { %s4822_s0 = inlined_call_operand.hbm [shape: f32[3,32], index: 0, kind: input, shape index: {}]   ;;  %s4823_s1 = inlined_call_operand.hbm [shape: f32[3,2048], index: 1, kind: input, shape index: {}]   ;;  %s4824_s2 = inlined_call_operand.hbm [shape: f32[2,6,128], index: 2, kind: input, shape index: {}]   ;;  %s4825_s3 = inlined_call_operand.hbm [shape: s32[1,1280], index: 3, kind: input, shape index: {}]   ;;  %s4826_s4 = inlined_call_operand.hbm [shape: s32[1,128], index: 4, kind: input, shape index: {}]   ;;  %s4827_s5 = inlined_call_operand.hbm [shape: f32[3,1], index: 5, kind: input, shape index: {}]   ;;  %s4828_s6 = inlined_call_operand.hbm [shape: f32[3,2048], index: 6, kind: output, shape index: {0}]   ;;  %s4829_s7 = inlined_call_operand.hbm [shape: f32[2,3,128], index: 7, kind: output, shape index: {1}]  }
   0x1   :  { %4850 = sst [smem:[#allocation30_spill]] %s4823_s1 }
   0x2   :  { %4851 = sst [smem:[#allocation31_spill]] %s4825_s3 }
   0x3   :  { %13 = vsyncpa [#allocation3], 0 }
   0x4   :  { %14 = vsyncpa [#allocation6], 0 }
   0x5   :  { %16 = vsyncpa [#allocation6 + $0x1], 0 }
   0x6   :  { %17 = vsyncpa [#allocation9], 0 }
   0x7   :  { %18 = vsyncpa [#allocation12], 0 }
   0x8   :  { %19 = vsyncpa [#allocation4], 0 }
   0x9   :  { %21 = vsyncpa [#allocation4 + $0x1], 0 }
   0xa   :  { %22 = vsyncpa [#allocation15], 0 }
   0xb   :  { %24 = vsyncpa [#allocation15 + $0x1], 0  ;;  %s3225_s24 = smov 0   ;;  %s3227_s25 = smov 0  }
   0xc   :  { %s3229_s26 = smov 0   ;;  %s3231_s27 = smov 0  }
   0xd LB: > { %4852 = sst [smem:[#allocation22_spill]] %s3165_s26  ;;  %s3171_s28 = smov [#allocation8]   ;;  %s3169_s27 = sphi %s3231_s27, %s5007_s27   ;;  %s3165_s26 = sphi %s3229_s26, %s5009_s26   ;;  %s3161_s25 = sphi %s3227_s25, %s5011_s25   ;;  %s3157_s24 = sphi %s3225_s24, %s5010_s24  }
   0xe   : > { %s247_s29 = sshll.u32 %s3171_s28, 4  ;;  %s3246_s30 = sadd.s32 4294967295, %s3169_s27   ;;  %s248_s29 = int_to_ptr.vmem [resolvable:$true] %s247_s29 }
   0xf   : > { %p2117_p0 = scmp.ge.s32.totalorder %s3169_s27, 1  ;;  %p4830_p1 = scmp.eq.s32.totalorder %s3246_s30, 0 }
  0x10   : > { %p223_p2 = scmp.lt.s32.totalorder %s3169_s27, 3  ;;  %s2116_s10 = sadd.s32 4294967294, %s3169_s27  }
  0x11   : > { %s3266_s11 = sadd.s32 1, %s3169_s27   ;;  %s4856_s3 = sld [smem:[#allocation31_spill]] }
  0x12   : > { %p3251_p3 = pnand %p2117_p0, %p223_p2  ;;  %4855 = sst [smem:[#allocation23_spill]] %s3266_s11 }
  0x13   : > { %s55_s12 = ssub.s32 %s3169_s27, %s3266_s11 }
  0x14   : > { %s4853_s8 = scalar_select %p3251_p3, 1, 0 }
  0x15   : > { %p2747_p5 = pneg %p3251_p3 }
  0x17   : > { %p3260_p6 = pnand %p2747_p5, %p4830_p1  ;;  %s2887_s15 = scalar_lea.hbm %s4856_s3, 160 }
  0x18   : > { %p2888_p7 = scmp.ne.s32.totalorder %s4856_s3, %s2887_s15  ;;  %p2894_p11 = scmp.lt.u32.totalorder %s2887_s15, %s4856_s3 }
  0x19   : > { %s4854_s9 = scalar_select %p3260_p6, 1, 0 }
  0x1a   : > { %p3278_p8 = pneg %p3260_p6 }
  0x1c   : > { %p2890_p9 = pnand %p3278_p8, %p2888_p7 }
  0x1e   : > { %p2891_p10 = pneg %p2890_p9 }
  0x20   : > { %p2896_p12 = pnand %p2894_p11, %p2891_p10 }
  0x22   : > { %2899 = shalt.err (!%p2896_p12)
}
  0x23   : > { %s2900_s21 = scalar_lea.vmem %s248_s29, 160  ;;  %p2908_p5 = scmp.lt.s32.totalorder %s248_s29, %s248_s29 }
  0x24   : > { %p2901_p13 = scmp.ne.s32.totalorder %s248_s29, %s2900_s21  ;;  %p2909_p4 = scmp.lt.s32.totalorder %s2900_s21, %s2900_s21 }
  0x26   : > { %p2903_p0 = pnand %p2901_p13, %p3278_p8  ;;  %p2910_p1 = por %p2909_p4, %p2908_p5 }
  0x28   : > { %p2904_p2 = pneg %p2903_p0 }
  0x2a   : > { %p2911_p3 = pnand %p2910_p1, %p2904_p2 }
  0x2c   : > { %2914 = shalt.err (!%p2911_p3)
}
  0x2d   : > { %2753 = dma.hbm_to_vmem [thread:$0]  (!%p3260_p6), %s4856_s3, 160, %s248_s29, [#allocation9]  }
  0x2e   : > { %p56_p1 = scmp.eq.s32.totalorder %s55_s12, 0  ;;  %s58_s28 = sadd.s32 1, %s3165_s26 }
  0x2f   : > { %p65_p3 = scmp.ne.s32.totalorder %s3165_s26, %s3161_s25  ;;  %p66_p4 = scmp.eq.s32.totalorder %s3169_s27, 0 }
  0x30   : > { %s3299_s13 = scalar_select %p56_p1, %s3165_s26, %s58_s28  }
  0x31   : > { %p3301_p7 = por %p66_p4, %p65_p3  ;;  %p71_p9 = scmp.ne.s32.totalorder %s3161_s25, %s3157_s24 }
  0x32   : > { %4858 = sst [smem:[#allocation24_spill]] %s3299_s13  ;;  %p184_p10 = scmp.eq.s32.totalorder %s3246_s30, 1 }
  0x33   : > { %p190_p11 = scmp.eq.s32.totalorder %s2116_s10, 1  ;;  %p4860_p12 = scmp.eq.s32.totalorder %s3246_s30, 0 }
  0x34   : > { %p2778_p0 = scmp.lt.s32.totalorder %s3169_s27, 2  ;;  %p3315_p2 = por %p184_p10, %p65_p3 }
  0x35   : > { %p3310_p13 = por %p4860_p12, %p71_p9  ;;  %p3319_p5 = por %p190_p11, %p71_p9 }
  0x36   : > { %s4862_s29 = scalar_select %p3315_p2, 1, 0 }
  0x37   : > { %s4861_s15 = scalar_select %p3310_p13, 1, 0 }
  0x38   : > { %s4863_s12 = scalar_select %p3319_p5, 1, 0 }
  0x39   : > { %s280_s16 = sand.u32 1, %s3169_s27   ;;  %s282_s17 = sand.u32 1, %s3165_s26  }
  0x3a   : > { %4864 = sst [smem:[#allocation25_spill]] %s4863_s12  ;;  %s2123_s19 = sshll.u32 %s282_s17, 5 }
  0x3b   : > { %s2413_s20 = sshll.u32 %s3169_s27, 9  ;;  %s4865_s1 = sld [smem:[#allocation30_spill]] }
  0x3c   : > { %s284_s23 = scalar_lea.vmem [#allocation5], %s2123_s19  ;;  %p3335_p1 = pnand %p2778_p0, %p3301_p7 }
  0x3d   : > { %s292_s28 = sshll.u32 %s284_s23, 4  ;;  %s3339_s13 = sshll.u32 %s282_s17, 3  ;;  %s3331_s28 = int_to_ptr.vmem [resolvable:$true] %s292_s28 }
  0x3e   : > { %s4866_s3 = scalar_select %p3335_p1, 1, 0 }
  0x3f   : > { %s3172_s21 = smov [#allocation2]   ;;  %s3343_s10 = scalar_lea.sflag [#allocation6], %s280_s16 }
  0x40   : > { %p4839_p4 = pneg %p3335_p1 }
  0x41   : > { %s3329_s22 = scalar_lea.hbm %s4865_s1, %s2413_s20  ;;  %s3341_s20 = sshll.u32 %s3172_s21, 4  ;;  %s237_s20 = int_to_ptr.vmem [resolvable:$true] %s3341_s20 }
  0x42   : > { %s2915_s26 = scalar_lea.hbm %s3329_s22, 512  ;;  %s2920_s23 = scalar_lea.hbm %s4865_s1, 1024 }
  0x43   : > { %p2916_p3 = scmp.ne.s32.totalorder %s3329_s22, %s2915_s26  ;;  %p2921_p10 = scmp.lt.u32.totalorder %s3329_s22, %s4865_s1 }
  0x44   : > { %p2922_p11 = scmp.lt.u32.totalorder %s2920_s23, %s2915_s26  ;;  %p2924_p0 = scmp.lt.u32.totalorder %s2915_s26, %s3329_s22 }
  0x45   : > { %p2918_p9 = pnand %p4839_p4, %p2916_p3 }
  0x46   : > { %p2923_p12 = por %p2922_p11, %p2921_p10 }
  0x47   : > { %p2919_p7 = pneg %p2918_p9 }
  0x48   : > { %p2925_p5 = por %p2924_p0, %p2923_p12 }
  0x4a   : > { %p2926_p2 = pnand %p2925_p5, %p2919_p7 }
  0x4c   : > { %2929 = shalt.err (!%p2926_p2)
}
  0x4d   : > { %s2930_s16 = scalar_lea.vmem %s3331_s28, 512  ;;  %s3173_s21 = smov [#allocation5]  }
  0x4e   : > { %p2931_p3 = scmp.ne.s32.totalorder %s3331_s28, %s2930_s16  ;;  %s2935_s14 = sshll.u32 %s3173_s21, 4  ;;  %s2936_s14 = int_to_ptr.vmem [resolvable:$false] %s2935_s14 }
  0x4f   : > { %s2937_s11 = scalar_lea.vmem %s2936_s14, 1024  ;;  %p2938_p6 = scmp.lt.s32.totalorder %s3331_s28, %s2936_s14 }
  0x50   : > { %p2933_p9 = pnand %p2931_p3, %p4839_p4  ;;  %p2939_p10 = scmp.lt.s32.totalorder %s2937_s11, %s2930_s16 }
  0x52   : > { %p2934_p13 = pneg %p2933_p9  ;;  %p2940_p11 = por %p2939_p10, %p2938_p6 }
  0x54   : > { %p2941_p12 = pnand %p2940_p11, %p2934_p13 }
  0x56   : > { %2944 = shalt.err (!%p2941_p12)
}
  0x57   : > { %2763 = dma.hbm_to_vmem [thread:$0]  (!%p3335_p1), %s3329_s22, 512, %s3331_s28, %s3343_s10  }
  0x58   : > { %s2945_s23 = scalar_lea.hbm %s4822_s0, 64 }
  0x59   : > { %p2946_p2 = scmp.ne.s32.totalorder %s4822_s0, %s2945_s23  ;;  %p2952_p5 = scmp.lt.u32.totalorder %s2945_s23, %s4822_s0 }
  0x5b   : > { %p2948_p6 = pnand %p2946_p2, %p3278_p8 }
  0x5d   : > { %p2949_p13 = pneg %p2948_p6 }
  0x5f   : > { %p2954_p7 = pnand %p2952_p5, %p2949_p13 }
  0x61   : > { %2957 = shalt.err (!%p2954_p7)
}
  0x62   : > { %s2958_s11 = scalar_lea.vmem %s237_s20, 64  ;;  %p2966_p10 = scmp.lt.s32.totalorder %s237_s20, %s237_s20 }
  0x63   : > { %p2959_p0 = scmp.ne.s32.totalorder %s237_s20, %s2958_s11  ;;  %p2967_p11 = scmp.lt.s32.totalorder %s2958_s11, %s2958_s11 }
  0x65   : > { %p2961_p3 = pnand %p2959_p0, %p3278_p8  ;;  %p2968_p12 = por %p2967_p11, %p2966_p10 }
  0x67   : > { %p2962_p9 = pneg %p2961_p3 }
  0x69   : > { %p2969_p4 = pnand %p2968_p12, %p2962_p9 }
  0x6b   : > { %2972 = shalt.err (!%p2969_p4)
}
  0x6c   : > { %p4867_p2 = scmp.ne.s32.totalorder %s4854_s9, 0  ;;  %s3174_s26 = smov [#allocation10]  }
  0x6d   : > { %s258_s19 = sshll.u32 %s3174_s26, 4  ;;  %s3175_s23 = smov [#allocation11]   ;;  %s259_s19 = int_to_ptr.vmem [resolvable:$true] %s258_s19 }
  0x6e   : > { %2750 = dma.hbm_to_vmem [thread:$0]  (!%p4867_p2), %s4822_s0, 64, %s237_s20, [#allocation3]  }
  0x6f   : > { %s269_s17 = sshll.u32 %s3175_s23, 4  ;;  %s2973_s14 = scalar_lea.hbm %s4826_s4, 16  ;;  %s270_s17 = int_to_ptr.vmem [resolvable:$true] %s269_s17 }
  0x70   : > { %p2974_p4 = scmp.ne.s32.totalorder %s4826_s4, %s2973_s14  ;;  %p2980_p5 = scmp.lt.u32.totalorder %s2973_s14, %s4826_s4 }
  0x72   : > { %p2976_p6 = pnand %p2974_p4, %p3278_p8 }
  0x74   : > { %p2977_p13 = pneg %p2976_p6 }
  0x76   : > { %p2982_p7 = pnand %p2980_p5, %p2977_p13 }
  0x78   : > { %2985 = shalt.err (!%p2982_p7)
}
  0x79   : > { %s2986_s20 = scalar_lea.vmem %s259_s19, 16  ;;  %s2993_s28 = scalar_lea.vmem %s259_s19, 32 }
  0x7a   : > { %p2987_p0 = scmp.ne.s32.totalorder %s259_s19, %s2986_s20  ;;  %p2994_p10 = scmp.lt.s32.totalorder %s259_s19, %s259_s19 }
  0x7b   : > { %p2995_p11 = scmp.lt.s32.totalorder %s2993_s28, %s2986_s20 }
  0x7c   : > { %p2989_p3 = pnand %p2987_p0, %p3278_p8 }
  0x7d   : > { %p2996_p12 = por %p2995_p11, %p2994_p10 }
  0x7e   : > { %p2990_p9 = pneg %p2989_p3 }
  0x80   : > { %p2997_p1 = pnand %p2996_p12, %p2990_p9 }
  0x82   : > { %3000 = shalt.err (!%p2997_p1)
}
  0x83   : > { %2756 = dma.hbm_to_vmem [thread:$0]  (!%p4867_p2), %s4826_s4, 16, %s259_s19, [#allocation9]  }
  0x84   : > { %s3001_s21 = scalar_lea.hbm %s4827_s5, 64 }
  0x85   : > { %p3002_p4 = scmp.ne.s32.totalorder %s4827_s5, %s3001_s21  ;;  %p3008_p1 = scmp.lt.u32.totalorder %s3001_s21, %s4827_s5 }
  0x87   : > { %p3004_p6 = pnand %p3002_p4, %p3278_p8 }
  0x89   : > { %p3005_p13 = pneg %p3004_p6 }
  0x8b   : > { %p3010_p5 = pnand %p3008_p1, %p3005_p13 }
  0x8d   : > { %3013 = shalt.err (!%p3010_p5)
}
  0x8e   : > { %s3014_s20 = scalar_lea.vmem %s270_s17, 64  ;;  %p3022_p9 = scmp.lt.s32.totalorder %s270_s17, %s270_s17 }
  0x8f   : > { %p3015_p7 = scmp.ne.s32.totalorder %s270_s17, %s3014_s20  ;;  %p3023_p10 = scmp.lt.s32.totalorder %s3014_s20, %s3014_s20 }
  0x91   : > { %p3017_p0 = pnand %p3015_p7, %p3278_p8  ;;  %p3024_p11 = por %p3023_p10, %p3022_p9 }
  0x93   : > { %p3018_p3 = pneg %p3017_p0 }
  0x95   : > { %p3025_p12 = pnand %p3024_p11, %p3018_p3 }
  0x97   : > { %3028 = shalt.err (!%p3025_p12)
}
  0x98   : > { %2759 = dma.hbm_to_vmem [thread:$0]  (!%p4867_p2), %s4827_s5, 64, %s270_s17, [#allocation12]  }
  0x99   : > { %s2127_s1 = sshll.u32 %s3169_s27, 7  ;;  %s303_s26 = scalar_lea.vmem [#allocation7], %s3339_s13 }
  0x9a   : > { %s310_s12 = sshll.u32 %s303_s26, 4  ;;  %s308_s21 = scalar_lea.hbm %s4824_s2, %s2127_s1  ;;  %s311_s12 = int_to_ptr.vmem [resolvable:$true] %s310_s12 }
  0x9b   : > { %s3029_s16 = scalar_lea.hbm %s308_s21, 128  ;;  %p4868_p4 = scmp.ne.s32.totalorder %s4866_s3, 0 }
  0x9c   : > { %p3030_p8 = scmp.ne.s32.totalorder %s308_s21, %s3029_s16  ;;  %s3034_s11 = scalar_lea.hbm %s4824_s2, 256 }
  0x9d   : > { %p4869_p6 = pneg %p4868_p4  ;;  %p3035_p2 = scmp.lt.u32.totalorder %s308_s21, %s4824_s2 }
  0x9e   : > { %p3036_p5 = scmp.lt.u32.totalorder %s3034_s11, %s3029_s16  ;;  %p3038_p0 = scmp.lt.u32.totalorder %s3029_s16, %s308_s21 }
  0x9f   : > { %p3032_p13 = pnand %p3030_p8, %p4869_p6 }
  0xa0   : > { %p3037_p7 = por %p3036_p5, %p3035_p2 }
  0xa1   : > { %p3033_p1 = pneg %p3032_p13 }
  0xa2   : > { %p3039_p3 = por %p3038_p0, %p3037_p7 }
  0xa4   : > { %p3040_p9 = pnand %p3039_p3, %p3033_p1 }
  0xa6   : > { %3043 = shalt.err (!%p3040_p9)
}
  0xa7   : > { %s3044_s13 = scalar_lea.vmem %s311_s12, 128  ;;  %p4870_p11 = pmov %p4869_p6 }
  0xa8   : > { %p3045_p10 = scmp.ne.s32.totalorder %s311_s12, %s3044_s13  ;;  %s3176_s20 = smov [#allocation7]  }
  0xa9   : > { %s3049_s19 = sshll.u32 %s3176_s20, 4  ;;  %s3050_s19 = int_to_ptr.vmem [resolvable:$false] %s3049_s19 }
  0xaa   : > { %p3047_p12 = pnand %p3045_p10, %p4870_p11  ;;  %s3051_s28 = scalar_lea.vmem %s3050_s19, 256 }
  0xab   : > { %p3052_p6 = scmp.lt.s32.totalorder %s311_s12, %s3050_s19  ;;  %p3053_p13 = scmp.lt.s32.totalorder %s3051_s28, %s3044_s13 }
  0xac   : > { %p3048_p8 = pneg %p3047_p12 }
  0xad   : > { %p3054_p2 = por %p3053_p13, %p3052_p6 }
  0xaf   : > { %p3055_p5 = pnand %p3054_p2, %p3048_p8 }
  0xb1   : > { %3058 = shalt.err (!%p3055_p5)
}
  0xb2   : > { %2766 = dma.hbm_to_vmem [thread:$0]  (!%p4868_p4), %s308_s21, 128, %s311_s12, %s3343_s10  }
  0xb3   : > { %p4871_p1 = scmp.ne.s32.totalorder %s4853_s8, 0 }
  0xb5   : > { %319 = sbr.rel (%p4871_p1) target bundleno = 863 (0x35f), region = 44 }
  0xbc   : > { %p4872_p7 = scmp.eq.s32.totalorder %s3246_s30, 0 }
  0xbe   : > { %3132 = dma.done.wait (%p4872_p7), [#allocation3], 64   ;;  %p4873_p0 = pmov %p4872_p7 }
  0xbf   : > { %s325_s1 = sand.u32 1, %s3246_s30   ;;  %s3454_s26 = sand.u32 1, %s3161_s25  }
  0xc0   : > { %3134 = vsyncadd (%p4873_p0), [#allocation3], 4294967232  ;;  %s2130_s3 = sshll.u32 %s3454_s26, 5  ;;  %s326_s18 = scalar_lea.sflag [#allocation6], %s325_s1 }
  0xc1   : > { %s329_s10 = scalar_lea.vmem [#allocation5], %s2130_s3  ;;  %p4874_p4 = scmp.ne.s32.totalorder %s4861_s15, 0 }
  0xc3   : > { %3136 = dma.done.wait (%p4874_p4), %s326_s18, 640  }
  0xc4   : > { %3138 = vsyncadd (%p4874_p4), %s326_s18, 4294966656  ;;  %s2131_s8 = sshll.u32 %s3454_s26, 3  ;;  %p4875_p3 = pmov %p4873_p0 }
  0xc5   : > { %s338_s12 = scalar_lea.vmem [#allocation7], %s2131_s8 }
  0xc6   : > { %3140 = dma.done.wait (%p4875_p3), [#allocation9], 176   ;;  %p4876_p9 = pmov %p4873_p0 }
  0xc7   : > { %p4877_p10 = pmov %p4873_p0 }
  0xc8   : > { %3142 = vsyncadd (%p4876_p9), [#allocation9], 4294967120 }
  0xc9   : > { %3144 = dma.done.wait (%p4877_p10), [#allocation12], 64   ;;  %p4878_p11 = pmov %p4873_p0 }
  0xca   : > { %v3177_v0 = vmov 0   ;;  %v3473_v1 = vld [vmem:[%s338_s12] sm:$0x3f]  ;;  %s3178_s15 = smov 1   ;;  %s3179_s23 = smov 127   ;;  %v4843_v16 = vmov 0.0   ;;  %v439_v17 = vlaneseq }
  0xcb   : > { %3146 = vsyncadd (%p4878_p11), [#allocation12], 4294967232  ;;  %2866 = vset.pattern.permute.xlu0 %v3177_v0  ;;  %v3475_v2 = vld [vmem:[%s329_s10 + $0x8] sm:$0x77]  ;;  %v3479_v4 = vld [vmem:[%s329_s10] sm:$0x77]  ;;  %863 = vmatprep.mubr.f32.mxu0 %v4843_v16 }
  0xcc   : > { %v2831_v3 = vpack.i.bf16 %v3473_v1, %v3475_v2  ;;  %v3483_v5 = vcombine.high %v3479_v4, %v3479_v4  ;;  %v3487_v6 = vcombine.high %v3475_v2, %v3475_v2  ;;  %v3491_v8 = vld [vmem:[%s329_s10 + $0x10] sm:$0x77]  ;;  %v3496_v10 = vrot.slane %v3473_v1, 3  ;;  %v3502_v12 = vld [vmem:[%s329_s10 + $0x18] sm:$0x77]  ;;  %934 = vmatprep.mubr.f32.mxu1 %v4843_v16  ;;  %s2149_s21 = sshll.u32 %s3246_s30, 10 }
  0xcd   : > { %v3500_v11 = vcombine.high %v3491_v8, %v3491_v8  ;;  %v3508_v14 = vcombine.high %v3502_v12, %v3502_v12  ;;  %v413_v18 = vld [vmem:[#allocation8] sm:$0xff]  ;;  %v3519_v19 = vshrl.u32 %v439_v17, 7  ;;  %v1112_v20 = vld [vmem:[#allocation10] sm:$0x1]  ;;  %v1113_v21 = vstv %s2149_s21  ;;  %v414_v22 = vld [vmem:[#allocation8 + $0x8] sm:$0x3] }
  0xce   : > { %2832 = vrot.lane.b32.xlu1 %v2831_v3, %s3178_s15  ;;  %2827 = vrot.lane.b32.xlu0 %v2831_v3, %s3179_s23  ;;  %v2841_v7 = vpack.i.bf16 %v3483_v5, %v3479_v4  ;;  %v2851_v9 = vpack.i.bf16 %v3491_v8, %v3487_v6  ;;  %vm415_vm0 = vcmp.eq.s32.totalorder %v413_v18, 0  ;;  %vm417_vm1 = vcmp.eq.s32.totalorder %v413_v18, 127  ;;  %s4440_s16 = scalar_lea.vmem [#allocation13], %s2130_s3  ;;  %s2414_s9 = sshll.u32 %s3246_s30, 9 }
  0xcf   : > { %v2856_v13 = vpack.i.bf16 %v3500_v11, %v3496_v10  ;;  %v2861_v15 = vpack.i.bf16 %v3508_v14, %v3502_v12  ;;  %v464_v23 = vsub.s32 2, %v3519_v19  ;;  %v3522_v24 = vand.u32 127, %v439_v17  ;;  %s4752_s22 = scalar_lea.hbm %s4828_s6, %s2414_s9  ;;  %s1940_s17 = sshll.u32 %s4440_s16, 4  ;;  %s1941_s17 = int_to_ptr.vmem [resolvable:$true] %s1940_s17 }
  0xd0   : > { %v3525_v25 = vsel %vm415_vm0, 1, %v3177_v0  ;;  %v3528_v26 = vsel %vm417_vm1, 1, %v3177_v0  ;;  %v1114_v27 = vsub.s32 %v1112_v20, %v1113_v21  ;;  %v3531_v28 = vsub.s32 0, %v3519_v19  ;;  %s1921_s13 = scalar_lea.sflag [#allocation4], %s3454_s26  ;;  %s3059_s20 = scalar_lea.vmem %s1941_s17, 512 }
  0xd1   : > { %vm418_vm2 = vcmp.eq.s32.totalorder %v414_v22, 127  ;;  %v3534_v29 = vsub.s32 1, %v3519_v19  ;;  %v468_v30 = vsub.s32 3, %v3519_v19  ;;  %v472_v31 = vsub.s32 4, %v3519_v19  ;;  %p3060_p12 = scmp.ne.s32.totalorder %s1941_s17, %s3059_s20  ;;  %p5003_p8 = scmp.ne.s32.totalorder %s4862_s29, 0 }
  0xd2   : > { %2842 = vrot.lane.b32.xlu1 %v2841_v7, %s3178_s15  ;;  %2837 = vrot.lane.b32.xlu0 %v2841_v7, %s3179_s23  ;;  %v476_v32 = vsub.s32 5, %v3519_v19  ;;  %v480_v33 = vsub.s32 6, %v3519_v19  ;;  %v3543_v36 = vrot.slane %v3525_v25, %v464_v23  ;;  %v3546_v37 = vrot.slane %v3528_v26, %v464_v23  ;;  %s3183_s19 = smov [#allocation13]  }
  0xd3   : > { %v484_v39 = vsub.s32 7, %v3519_v19  ;;  %v3551_v40 = vsel %vm418_vm2, 1, %v3177_v0  ;;  %vm416_vm3 = vcmp.eq.s32.totalorder %v414_v22, 0  ;;  %v457_v41 = vrot.slane %v3525_v25, %v3531_v28  ;;  %p3061_p6 = pnand %p3060_p12, %p5003_p8  ;;  %s3063_s28 = sshll.u32 %s3183_s19, 4  ;;  %s3064_s28 = int_to_ptr.vmem [resolvable:$false] %s3063_s28 }
  0xd4   : > { %v3556_v42 = vrot.slane %v1114_v27, %v3531_v28  ;;  %v461_v43 = vrot.slane %v3525_v25, %v3534_v29  ;;  %v554_v44 = vrot.slane %v3528_v26, %v3534_v29  ;;  %vm441_vm4 = vcmp.lt.s32.totalorder %v3522_v24, 1  ;;  %s3065_s1 = scalar_lea.vmem %s3064_s28, 1024  ;;  %p3066_p2 = scmp.lt.s32.totalorder %s1941_s17, %s3064_s28 }
  0xd5   : > { %vm534_vm5 = vcmp.lt.s32.totalorder %v3522_v24, 127  ;;  %v3565_v45 = vrot.slane %v3528_v26, %v468_v30  ;;  %v3568_v46 = vrot.slane %v3528_v26, %v472_v31  ;;  %v3571_v47 = vrot.slane %v3528_v26, %v476_v32  ;;  %p3062_p13 = pneg %p3061_p6  ;;  %p3067_p5 = scmp.lt.s32.totalorder %s3065_s1, %s3059_s20 }
  0xd6   : > { %2852 = vrot.lane.b32.xlu1 %v2851_v9, %s3178_s15  ;;  %2847 = vrot.lane.b32.xlu0 %v2851_v9, %s3179_s23  ;;  %v3574_v48 = vrot.slane %v3528_v26, %v480_v33  ;;  %vm496_vm6 = vcmp.eq.s32.totalorder %v3543_v36, 1  ;;  %vm589_vm7 = vcmp.eq.s32.totalorder %v3546_v37, 1  ;;  %v582_v49 = vrot.slane %v3551_v40, %v3531_v28 }
  0xd7   : > { %v3583_v51 = vrot.slane %v3525_v25, %v472_v31  ;;  %v3587_v52 = vsel %vm416_vm3, 1, %v3177_v0  ;;  %v3590_v53 = vrot.slane %v3528_v26, %v484_v39  ;;  %v3593_v54 = vrot.slane %v3525_v25, %v476_v32  ;;  %p3068_p1 = por %p3067_p5, %p3066_p2 }
  0xd8   : > { %vm657_vm8 = vcmask 1042432   ;;  %vm3597_vm9 = vcmp.eq.s32.totalorder %v461_v43, 1  ;;  %vm3601_vm10 = vcmp.eq.s32.totalorder %v554_v44, 1  ;;  %v3606_v59 = vrot.slane %v3525_v25, %v480_v33 }
  0xd9   : > { %v3609_v60 = vrot.slane %v3525_v25, %v468_v30  ;;  %v3618_v0 = vrot.slane %v3525_v25, %v484_v39  ;;  %vm668_vm11 = vcmask 1045504   ;;  %vm590_vm12 = vcmp.eq.s32.totalorder %v3565_v45, 1  ;;  %p3069_p7 = pnand %p3068_p1, %p3062_p13 }
  0xda   : > { %437 = vrot.lane.b32.xlu1 %v3496_v10, %s3178_s15  ;;  %2857 = vrot.lane.b32.xlu0 %v2856_v13, %s3179_s23  ;;  %vm591_vm13 = vcmp.eq.s32.totalorder %v3568_v46, 1  ;;  %v3632_v20 = vadd.s32 128, %v3519_v19  ;;  %v3635_v21 = vadd.s32 136, %v3519_v19  ;;  %vm498_vm14 = vcmp.eq.s32.totalorder %v3583_v51, 1 }
  0xdb   : > { %v3640_v23 = vadd.s32 8, %v3519_v19  ;;  %v3643_v25 = vadd.s32 384, %v3519_v19  ;;  %v3646_v27 = vadd.s32 392, %v3519_v19  ;;  %v3651_v39 = vadd.s32 256, %v3519_v19 }
  0xdc   : > { %v3654_v43 = vadd.s32 264, %v3519_v19  ;;  %vm3656_vm15 = vcmp.eq.s32.totalorder %v457_v41, 1  ;;  %vm592_vm0 = vcmp.eq.s32.totalorder %v3571_v47, 1  ;;  %v3663_v13 = vadd.s32 144, %v3519_v19 }
  0xdd   : > { %v3666_v9 = vadd.s32 152, %v3519_v19  ;;  %v3669_v7 = vadd.s32 16, %v3519_v19  ;;  %vm499_vm1 = vcmp.eq.s32.totalorder %v3593_v54, 1  ;;  %vm593_vm3 = vcmp.eq.s32.totalorder %v3574_v48, 1 }
  0xde   : > { %2862 = vrot.lane.b32.xlu1 %v2861_v15, %s3179_s23  ;;  %431 = vrot.lane.b32.xlu0 %v3500_v11, %s3178_s15  ;;  %4885 = vst [vmem:[#allocation26_spill] sm:$0xff] %v3663_v13  ;;  %vm3702_vm2 = vcmp.eq.s32.totalorder %v582_v49, 1  ;;  %v4893_v49 = vrot.slane %v3483_v5, 5 }
  0xdf   : > { %4886 = vst [vmem:[#allocation27_spill] sm:$0xff] %v3666_v9  ;;  %4887 = vst [vmem:[#allocation28_spill] sm:$0xff] %v3669_v7  ;;  %v4894_v9 = vrot.slane %v3479_v4, 5 }
  0xe2   : > { %435 = vrot.lane.b32.xlu1 %v3508_v14, %s3178_s15  ;;  %433 = vrot.lane.b32.xlu0 %v3502_v12, %s3178_s15 }
 0x140   : > { %v3611_v61 = vpop.permute.xlu1 %2832  ;;  %v3613_v62 = vpop.permute.xlu0 %2827 }
 0x141   : > { %v2834_v22 = vunpack.i.l.bf16 %v3611_v61  ;;  %v2835_v30 = vunpack.i.h.bf16 %v3611_v61  ;;  %v2829_v31 = vunpack.i.l.bf16 %v3613_v62  ;;  %v2830_v61 = vunpack.i.h.bf16 %v3613_v62 }
 0x144   : > { %v2843_v32 = vpop.permute.xlu1 %2842  ;;  %v2838_v33 = vpop.permute.xlu0 %2837 }
 0x145   : > { %v2845_v44 = vunpack.i.h.bf16 %v2843_v32  ;;  %v2844_v16 = vunpack.i.l.bf16 %v2843_v32  ;;  %v2840_v18 = vunpack.i.h.bf16 %v2838_v33  ;;  %v2839_v15 = vunpack.i.l.bf16 %v2838_v33 }
 0x147   : > { %v3673_v32 = vsel %vm441_vm4, %v2845_v44, %v2834_v22  ;;  %v449_v41 = vsel %vm441_vm4, %v2844_v16, %v2845_v44  ;;  %v541_v33 = vsel %vm534_vm5, %v2840_v18, %v2829_v31  ;;  %v542_v62 = vsel %vm534_vm5, %v2839_v15, %v2840_v18 }
 0x148   : > { %v506_v38 = vsel %vm496_vm6, %v3673_v32, %v449_v41  ;;  %v3687_v55 = vsel %vm534_vm5, %v2830_v61, %v2839_v15  ;;  %v599_v44 = vsel %vm589_vm7, %v542_v62, %v541_v33  ;;  %v2853_v17 = vpop.permute.xlu1 %2852  ;;  %v2848_v3 = vpop.permute.xlu0 %2847  ;;  %v3693_v63 = vsel %vm441_vm4, %v2835_v30, %v2844_v16 }
 0x149   : > { %v3695_v18 = vrot.slane %v599_v44, 2  ;;  %v2855_v56 = vunpack.i.h.bf16 %v2853_v17  ;;  %v2854_v34 = vunpack.i.l.bf16 %v2853_v17  ;;  %v2850_v50 = vunpack.i.h.bf16 %v2848_v3 }
 0x14a   : > { %vm594_vm6 = vcmp.eq.s32.totalorder %v3590_v53, 1  ;;  %v4890_v16 = vrot.slane %v3551_v40, %v3534_v29  ;;  %v2849_v15 = vunpack.i.l.bf16 %v2848_v3  ;;  %v505_v17 = vsel %vm3597_vm9, %v449_v41, %v3693_v63 }
 0x14b   : > { %v598_v44 = vsel %vm3601_vm10, %v3687_v55, %v542_v62  ;;  %v660_v7 = vsel %vm657_vm8, %v506_v38, %v4893_v49  ;;  %v3724_v40 = vsel %vm441_vm4, %v2834_v22, %v2854_v34  ;;  %v659_v57 = vsel %vm657_vm8, %v505_v17, %v4894_v9 }
 0x14c   : > { %vm3709_vm7 = vcmp.eq.s32.totalorder %v4890_v16, 1  ;;  %v446_v16 = vsel %vm441_vm4, %v2854_v34, %v2855_v56  ;;  %v638_v3 = vrot.slane %v598_v44, 2  ;;  %v539_v58 = vsel %vm534_vm5, %v2849_v15, %v2850_v50  ;;  %v438_v41 = vpop.permute.xlu1 %437  ;;  %v2858_v38 = vpop.permute.xlu0 %2857 }
 0x14d   : > { %v540_v5 = vsel %vm534_vm5, %v2829_v31, %v2849_v15  ;;  %v3737_v22 = vsel %vm668_vm11, %v660_v7, %v3695_v18  ;;  %v3740_v62 = vadd.s32 400, %v3519_v19  ;;  %v3748_v9 = vsel %vm441_vm4, %v438_v41, %v2835_v30 }
 0x14e   : > { %v600_v4 = vsel %vm590_vm12, %v541_v33, %v540_v5  ;;  %v601_v34 = vsel %vm591_vm13, %v540_v5, %v539_v58  ;;  %v2860_v31 = vunpack.i.h.bf16 %v2858_v38  ;;  %v4896_v15 = vrot.slane %v3587_v52, %v3534_v29 }
 0x14f   : > { %4895 = vst [vmem:[#allocation29_spill] sm:$0xff] %v3740_v62  ;;  %v3757_v17 = vrot.slane %v600_v4, 2  ;;  %v3759_v44 = vrot.slane %v601_v34, 2  ;;  %v2859_v45 = vunpack.i.l.bf16 %v2858_v38  ;;  %v3764_v46 = vsel %vm498_vm14, %v446_v16, %v3724_v40 }
 0x150   : > { %vm3753_vm9 = vcmp.eq.s32.totalorder %v4896_v15, 1  ;;  %v538_v30 = vsel %vm534_vm5, %v2850_v50, %v2860_v31  ;;  %v3769_v33 = vsel %vm668_vm11, %v659_v57, %v638_v3  ;;  %v689_v29 = vrot.slane %v3737_v22, 7  ;;  %v2863_v38 = vpop.permute.xlu1 %2862  ;;  %v432_v4 = vpop.permute.xlu0 %431 }
 0x151   : > { %v696_v49 = vrot.slane %v638_v3, 7  ;;  %vm500_vm10 = vcmp.eq.s32.totalorder %v3606_v59, 1  ;;  %v4899_v5 = vrot.slane %v3587_v52, %v3531_v28  ;;  %v602_v57 = vsel %vm592_vm0, %v539_v58, %v538_v30 }
 0x152   : > { %v4849_v34 = vrot.slane %v3769_v33, 7  ;;  %v698_v15 = vrot.slane %v3695_v18, 7  ;;  %v3791_v52 = vsel %vm534_vm5, %v2859_v45, %v2830_v61  ;;  %v2864_v62 = vunpack.i.l.bf16 %v2863_v38 }
 0x153   : > { %vm3777_vm13 = vcmp.eq.s32.totalorder %v4899_v5, 1  ;;  %v2865_v5 = vunpack.i.h.bf16 %v2863_v38  ;;  %v445_v13 = vsel %vm441_vm4, %v2855_v56, %v432_v4  ;;  %vm497_vm14 = vcmp.eq.s32.totalorder %v3609_v60, 1 }
 0x154   : > { %v3796_v50 = vrot.slane %v602_v57, 2  ;;  %v509_v47 = vsel %vm499_vm1, %v445_v13, %v446_v16  ;;  %vm4902_vm0 = vcmask 1040384   ;;  %v537_v57 = vsel %vm534_vm5, %v2860_v31, %v2864_v62 }
 0x155   : > { %v3803_v58 = vsel %vm4902_vm0, %v4849_v34, %v696_v49  ;;  %vm4903_vm12 = vmmov %vm4902_vm0  ;;  %v535_v38 = vsel %vm534_vm5, %v2865_v5, %v2859_v45  ;;  %v536_v56 = vsel %vm534_vm5, %v2864_v62, %v2865_v5  ;;  %v730_v54 = vrot.slane %v3737_v22, 6  ;;  %v436_v34 = vpop.permute.xlu1 %435  ;;  %v434_v5 = vpop.permute.xlu0 %433 }
 0x156   : > { %v3806_v61 = vsel %vm4903_vm12, %v689_v29, %v698_v15  ;;  %v603_v16 = vsel %vm593_vm3, %v538_v30, %v537_v57  ;;  %v604_v49 = vsel %vm594_vm6, %v537_v57, %v536_v56  ;;  %v605_v15 = vsel %vm3702_vm2, %v536_v56, %v535_v38  ;;  %vm4908_vm1 = vmmov %vm4902_vm0 }
 0x157   : > { %v606_v45 = vsel %vm3709_vm7, %v535_v38, %v3791_v52  ;;  %v4904_v62 = vrot.slane %v3528_v26, %v3531_v28  ;;  %v3831_v48 = vrot.slane %v603_v16, 2  ;;  %v3833_v53 = vrot.slane %v604_v49, 2  ;;  %vm4917_vm6 = vmmov %vm4902_vm0 }
 0x158   : > { %v3835_v30 = vrot.slane %v605_v15, 2  ;;  %v3837_v36 = vrot.slane %v606_v45, 2  ;;  %v704_v37 = vrot.slane %v3796_v50, 7  ;;  %v4907_v38 = vrot.slane %v3491_v8, 5  ;;  %vm4920_vm7 = vmmov %vm4902_vm0 }
 0x159   : > { %vm3827_vm5 = vcmp.eq.s32.totalorder %v4904_v62, 1  ;;  %v771_v26 = vsel %vm4908_vm1, %v638_v3, %v689_v29  ;;  %v442_v28 = vsel %vm441_vm4, %v436_v34, %v438_v41  ;;  %v708_v57 = vrot.slane %v3833_v53, 7  ;;  %vm4923_vm12 = vmmov %vm4902_vm0 }
 0x15a   : > { %v663_v56 = vsel %vm657_vm8, %v509_v47, %v4907_v38  ;;  %v710_v16 = vrot.slane %v3835_v30, 7  ;;  %v443_v15 = vsel %vm441_vm4, %v434_v5, %v436_v34  ;;  %v752_v45 = vrot.slane %v3837_v36, 6 }
 0x15b   : > { %v3854_v8 = vsel %vm668_vm11, %v663_v56, %v3796_v50  ;;  %v2555_v3 = vpack.c.bf16 %v771_v26, %v3769_v33  ;;  %v513_v41 = vsel %vm3753_vm9, %v3748_v9, %v442_v28  ;;  %vm729_vm2 = vcmask 1041408   ;;  %vm4921_vm9 = vmmov %vm4902_vm0 }
 0x15c   : > { %v692_v29 = vrot.slane %v3854_v8, 7  ;;  %v733_v47 = vrot.slane %v3854_v8, 6  ;;  %v4909_v62 = vrot.slane %v3496_v10, 5  ;;  %v444_v38 = vsel %vm441_vm4, %v432_v4, %v434_v5  ;;  %vm4916_vm4 = vmmov %vm4902_vm0 }
 0x15d   : > { %2556 = vmatprep.subr.bf16.mxu0 %v2555_v3  ;;  %v510_v7 = vsel %vm500_vm10, %v444_v38, %v445_v13  ;;  %vm4910_vm3 = vcmp.eq.s32.totalorder %v3618_v0, 1  ;;  %v512_v49 = vsel %vm3777_vm13, %v442_v28, %v443_v15  ;;  %v4912_v4 = vrot.slane %v3502_v12, 5 }
 0x15e   : > { %v667_v34 = vsel %vm657_vm8, %v513_v41, %v4909_v62  ;;  %v511_v26 = vsel %vm4910_vm3, %v443_v15, %v444_v38  ;;  %v4911_v41 = vrot.slane %v3500_v11, 5  ;;  %v4913_v3 = vrot.slane %v3508_v14, 5  ;;  %vm4926_vm3 = vmmov %vm4916_vm4 }
 0x15f   : > { %v3869_v56 = vsel %vm668_vm11, %v667_v34, %v3837_v36  ;;  %v665_v5 = vsel %vm657_vm8, %v511_v26, %v4912_v4  ;;  %v507_v11 = vsel %vm497_vm14, %v3724_v40, %v3673_v32  ;;  %v4914_v12 = vrot.slane %v3487_v6, 5 }
 0x160   : > { %v737_v10 = vrot.slane %v3869_v56, 6  ;;  %v664_v24 = vsel %vm657_vm8, %v510_v7, %v4911_v41  ;;  %v666_v59 = vsel %vm657_vm8, %v512_v49, %v4913_v3  ;;  %v4915_v49 = vrot.slane %v3475_v2, 5 }
 0x161   : > { %v3889_v0 = vsel %vm668_vm11, %v664_v24, %v3831_v48  ;;  %v3893_v13 = vsel %vm668_vm11, %v666_v59, %v3835_v30  ;;  %v662_v14 = vsel %vm657_vm8, %v3764_v46, %v4914_v12  ;;  %v700_v32 = vrot.slane %v3757_v17, 7 }
 0x162   : > { %v734_v51 = vrot.slane %v3889_v0, 6  ;;  %v736_v28 = vrot.slane %v3893_v13, 6  ;;  %v661_v15 = vsel %vm657_vm8, %v507_v11, %v4915_v49  ;;  %v3910_v62 = vsel %vm668_vm11, %v662_v14, %v3759_v44 }
 0x163   : > { %v672_v60 = vsel %vm668_vm11, %v661_v15, %v3757_v17  ;;  %v691_v6 = vrot.slane %v3910_v62, 7  ;;  %v702_v40 = vrot.slane %v3759_v44, 7  ;;  %v732_v38 = vrot.slane %v3910_v62, 6 }
 0x164   : > { %v690_v46 = vrot.slane %v672_v60, 7  ;;  %v731_v34 = vrot.slane %v672_v60, 6  ;;  %v597_v2 = vsel %vm3827_vm5, %v3791_v52, %v3687_v55  ;;  %v4918_v24 = vrot.slane %v3473_v1, 5 }
 0x165   : > { %v703_v7 = vsel %vm4916_vm4, %v691_v6, %v702_v40  ;;  %v773_v26 = vsel %vm4917_vm6, %v3757_v17, %v691_v6  ;;  %v637_v41 = vrot.slane %v597_v2, 2  ;;  %v4919_v4 = vsel %vm3656_vm15, %v3693_v63, %v3748_v9  ;;  %vm4927_vm6 = vmmov %vm4926_vm3 }
 0x166   : > { %v658_v3 = vsel %vm657_vm8, %v4919_v4, %v4918_v24  ;;  %v701_v59 = vsel %vm4920_vm7, %v690_v46, %v700_v32  ;;  %v2565_v11 = vpack.c.bf16 %v773_v26, %v672_v60  ;;  %v772_v55 = vsel %vm4921_vm9, %v3695_v18, %v690_v46  ;;  %vm4928_vm7 = vmmov %vm4926_vm3  ;;  %v4002_v4 = vld [vmem:[#allocation2] sm:$0x7] }
 0x167   : > { %v740_v52 = vrot.slane %v3757_v17, 6  ;;  %vm795_vm10 = vcmask 261120   ;;  %v669_v31 = vsel %vm668_vm11, %v658_v3, %v637_v41  ;;  %v4922_v1 = vrot.slane %v3769_v33, 7  ;;  %vm4929_vm9 = vmmov %vm4926_vm3 }
 0x168   : > { %v2567_v12 = vpack.c.bf16 %v772_v55, %v3737_v22  ;;  %v779_v63 = vsel %vm729_vm2, %v3806_v61, %v731_v34  ;;  %2566 = vmatprep.subr.bf16.mxu1 %v2565_v11  ;;  %vm3181_vm15 = vmmov 1   ;;  %v738_v49 = vrot.slane %v3695_v18, 6 }
 0x169   : > { %v770_v35 = vsel %vm4923_vm12, %v637_v41, %v4922_v1  ;;  %v741_v14 = vsel %vm729_vm2, %v731_v34, %v740_v52  ;;  %vm3946_vm13 = vmpackc.low %vm657_vm8, %vm3181_vm15  ;;  %v778_v33 = vsel %vm729_vm2, %v3803_v58, %v730_v54  ;;  %v744_v61 = vrot.slane %v3796_v50, 6 }
 0x16a   : > { %v2557_v9 = vpack.c.bf16 %v770_v35, %v669_v31  ;;  %2568 = vmatpush1.bf16.msra.mxu1 %v2567_v12  ;;  %v2559_v15 = vpack.c.bf16 %v741_v14, %v779_v63  ;;  %v781_v60 = vsel %vm729_vm2, %v703_v7, %v733_v47  ;;  %v742_v6 = vrot.slane %v3759_v44, 6  ;;  %vm4930_vm12 = vmmov %vm4926_vm3  ;;  %v4940_v14 = vld [vmem:[#allocation27_spill] sm:$0xff] }
 0x16b   : > { %vm1264_vm8 = vcmp.eq.s32.totalorder %v3632_v20, %v3556_v42  ;;  %vm1265_vm14 = vcmp.eq.s32.totalorder %v3635_v21, %v3556_v42  ;;  %v739_v18 = vsel %vm729_vm2, %v730_v54, %v738_v49  ;;  %v780_v58 = vsel %vm729_vm2, %v701_v59, %v732_v38  ;;  %vm4931_vm15 = vmmov %vm4926_vm3  ;;  %v4939_v21 = vld [vmem:[#allocation26_spill] sm:$0xff] }
 0x16c   : > { %2558 = vmatpush1.bf16.msra.mxu0 %v2557_v9  ;;  %v693_v32 = vrot.slane %v3889_v0, 7  ;;  %v676_v40 = vsel %vm668_vm11, %v665_v5, %v3833_v53  ;;  %vm1296_vm0 = vcmp.eq.s32.totalorder %v3643_v25, %v3556_v42  ;;  %vm1297_vm5 = vcmp.eq.s32.totalorder %v3646_v27, %v3556_v42  ;;  %v4943_v27 = vld [vmem:[#allocation29_spill] sm:$0xff] }
 0x16d   : > { %2561 = vmatprep.subr.msk.bf16.mxu0 %vm3946_vm13, %v2559_v15  ;;  %v2562_v46 = vpack.c.bf16 %v739_v18, %v778_v33  ;;  %v745_v22 = vsel %vm729_vm2, %v733_v47, %v744_v61  ;;  %v743_v54 = vsel %vm729_vm2, %v732_v38, %v742_v6  ;;  %v694_v34 = vrot.slane %v676_v40, 7  ;;  %v4946_v6 = vld [vmem:[#allocation28_spill] sm:$0xff] }
 0x16e   : > { %vm1248_vm11 = vcmp.eq.s32.totalorder %v3519_v19, %v3556_v42  ;;  %vm1249_vm1 = vcmp.eq.s32.totalorder %v3640_v23, %v3556_v42  ;;  %v2569_v5 = vpack.c.bf16 %v745_v22, %v781_v60  ;;  %v2572_v2 = vpack.c.bf16 %v743_v54, %v780_v58 }
 0x16f   : > { %v775_v7 = vsel %vm4926_vm3, %v3796_v50, %v693_v32  ;;  %v695_v26 = vrot.slane %v3893_v13, 7  ;;  %vm1280_vm4 = vcmp.eq.s32.totalorder %v3651_v39, %v3556_v42  ;;  %v709_v38 = vsel %vm4927_vm6, %v694_v34, %v708_v57  ;;  %vm4932_vm6 = vmmov %vm4926_vm3 }
 0x170   : > { %v2575_v47 = vpack.c.bf16 %v775_v7, %v3854_v8  ;;  %v735_v41 = vrot.slane %v676_v40, 6  ;;  %v774_v24 = vsel %vm4928_vm7, %v3759_v44, %v692_v29  ;;  %2564 = vmatpush1.bf16.msk.msra.mxu0 %vm3946_vm13, %v2562_v46  ;;  %2571 = vmatprep.subr.msk.bf16.mxu1 %vm3946_vm13, %v2569_v5  ;;  %v776_v57 = vsel %vm4930_vm12, %v3831_v48, %v694_v34  ;;  %vm4065_vm7 = vmpackc.low %vm1265_vm14, %vm1264_vm8 }
 0x171   : > { %v777_v3 = vsel %vm4929_vm9, %v3833_v53, %v695_v26  ;;  %v2577_v59 = vpack.c.bf16 %v774_v24, %v3910_v62  ;;  %v706_v11 = vrot.slane %v3831_v48, 7  ;;  %2574 = vmatpush1.bf16.msk.msra.mxu1 %vm3946_vm13, %v2572_v2  ;;  %v2587_v55 = vpack.c.bf16 %v776_v57, %v3889_v0  ;;  %vm4080_vm9 = vmpackc.low %vm1297_vm5, %vm1296_vm0 }
 0x172   : > { %2576 = vmatprep.subr.bf16.mxu0 %v2575_v47  ;;  %v2585_v44 = vpack.c.bf16 %v777_v3, %v676_v40  ;;  %v748_v52 = vrot.slane %v3833_v53, 6  ;;  %v711_v31 = vsel %vm4931_vm15, %v695_v26, %v710_v16  ;;  %v753_v1 = vsel %vm729_vm2, %v737_v10, %v752_v45  ;;  %vm4098_vm0 = vmpackc.low %vm1249_vm1, %vm1248_vm11 }
 0x173   : > { %v707_v62 = vsel %vm4926_vm3, %v693_v32, %v706_v11  ;;  %v785_v35 = vsel %vm729_vm2, %v711_v31, %v737_v10  ;;  %v705_v53 = vsel %vm4932_vm6, %v692_v29, %v704_v37  ;;  %v750_v16 = vrot.slane %v3835_v30, 6  ;;  %2139 = vmatmul.mubr.msk.f32.vlgmr.msra.gmra.mrb[0].mxu0 %vm795_vm10, %v4002_v4 }
 0x174   : > { %2586 = vmatprep.subr.bf16.mxu1 %v2585_v44  ;;  %v749_v36 = vsel %vm729_vm2, %v735_v41, %v748_v52  ;;  %v783_v45 = vsel %vm729_vm2, %v707_v62, %v735_v41  ;;  %v2589_v12 = vpack.c.bf16 %v753_v1, %v785_v35  ;;  %2142 = vmatmul.mubr.msk.f32.vlgmr.msra.gmra.mrb[0].mxu1 %vm795_vm10, %v4002_v4  ;;  %v4933_v8 = vrot.slane %v3831_v48, 6 }
 0x175   : > { %2578 = vmatpush1.bf16.msra.mxu0 %v2577_v59  ;;  %v2579_v50 = vpack.c.bf16 %v749_v36, %v783_v45  ;;  %v782_v37 = vsel %vm729_vm2, %v705_v53, %v734_v51  ;;  %v1167_v29 = vadd.s32 408, %v3519_v19  ;;  %2588 = vmatpush1.bf16.msra.mxu1 %v2587_v55  ;;  %v751_v10 = vsel %vm729_vm2, %v736_v28, %v750_v16 }
 0x176   : > { %v747_v30 = vsel %vm729_vm2, %v734_v51, %v4933_v8  ;;  %v784_v48 = vsel %vm729_vm2, %v709_v38, %v736_v28  ;;  %v4934_v63 = vmov 0.0   ;;  %v1119_v9 = vadd.s32 24, %v3519_v19  ;;  %2591 = vmatprep.subr.msk.bf16.mxu1 %vm3946_vm13, %v2589_v12 }
 0x177   : > { %v2582_v56 = vpack.c.bf16 %v747_v30, %v782_v37  ;;  %1005 = vmatprep.mubr.f32.mxu0 %v4934_v63  ;;  %2581 = vmatprep.subr.msk.bf16.mxu0 %vm3946_vm13, %v2579_v50  ;;  %v2592_v0 = vpack.c.bf16 %v751_v10, %v784_v48  ;;  %vm1281_vm2 = vcmp.eq.s32.totalorder %v3654_v43, %v3556_v42  ;;  %v1150_v51 = vadd.s32 272, %v3519_v19 }
 0x178   : > { %v1151_v28 = vadd.s32 280, %v3519_v19  ;;  %1076 = vmatprep.mubr.f32.mxu1 %v4934_v63  ;;  %vm1266_vm8 = vcmp.eq.s32.totalorder %v4939_v21, %v3556_v42  ;;  %vm1267_vm14 = vcmp.eq.s32.totalorder %v4940_v14, %v3556_v42  ;;  %v1136_v49 = vadd.s32 160, %v3519_v19  ;;  %vm4118_vm11 = vmpackc.low %vm1281_vm2, %vm1280_vm4 }
 0x179   : > { %v1137_v33 = vadd.s32 168, %v3519_v19  ;;  %2584 = vmatpush1.bf16.msk.msra.mxu0 %vm3946_vm13, %v2582_v56  ;;  %vm1298_vm5 = vcmp.eq.s32.totalorder %v4943_v27, %v3556_v42  ;;  %vm1299_vm12 = vcmp.eq.s32.totalorder %v1167_v29, %v3556_v42  ;;  %v1168_v15 = vadd.s32 416, %v3519_v19  ;;  %2594 = vmatpush1.bf16.msk.msra.mxu1 %vm3946_vm13, %v2592_v0  ;;  %vm4136_vm4 = vmpackc.low %vm1267_vm14, %vm1266_vm8  ;;  %v1912_v27 = vld [vmem:[#allocation11] sm:$0x7] }
 0x17a   : > { %v1169_v61 = vadd.s32 424, %v3519_v19  ;;  %v3182_v60 = vmov 1.0|1.0   ;;  %vm1250_vm1 = vcmp.eq.s32.totalorder %v4946_v6, %v3556_v42  ;;  %vm1251_vm13 = vcmp.eq.s32.totalorder %v1119_v9, %v3556_v42  ;;  %vm4151_vm6 = vmpackc.low %vm1299_vm12, %vm1298_vm5  ;;  %1915 = vperm.xlu0 %2866, %v1912_v27  }
 0x17b   : > { %2596 = vmatprep.subr.msk.bf16.mxu0 %vm4065_vm7, %v3182_v60  ;;  %v1120_v17 = vadd.s32 32, %v3519_v19  ;;  %v1121_v18 = vadd.s32 40, %v3519_v19  ;;  %2628 = vmatprep.subr.msk.bf16.mxu1 %vm4080_vm9, %v3182_v60  ;;  %vm1282_vm15 = vcmp.eq.s32.totalorder %v1150_v51, %v3556_v42  ;;  %vm1283_vm3 = vcmp.eq.s32.totalorder %v1151_v28, %v3556_v42  ;;  %vm4169_vm9 = vmpackc.low %vm1251_vm13, %vm1250_vm1 }
 0x17c   : > { %v1152_v43 = vadd.s32 288, %v3519_v19  ;;  %v1153_v58 = vadd.s32 296, %v3519_v19  ;;  %2145 = vmatmul.mubr.msk.f32.vlgmr.msra.gmra.mrb[2].mxu0 %vm795_vm10, %v4002_v4  ;;  %vm1268_vm7 = vcmp.eq.s32.totalorder %v1136_v49, %v3556_v42  ;;  %vm1269_vm2 = vcmp.eq.s32.totalorder %v1137_v33, %v3556_v42  ;;  %2148 = vmatmul.mubr.msk.f32.vlgmr.msra.gmra.mrb[2].mxu1 %vm795_vm10, %v4002_v4  ;;  %vm4187_vm10 = vmpackc.low %vm1283_vm3, %vm1282_vm15 }
 0x17d   : > { %v1138_v40 = vadd.s32 176, %v3519_v19  ;;  %v1139_v46 = vadd.s32 184, %v3519_v19  ;;  %2598 = vmatpush3.bf16.msk.msra.mxu0 %vm4098_vm0, %v3182_v60  ;;  %vm1300_vm8 = vcmp.eq.s32.totalorder %v1168_v15, %v3556_v42  ;;  %vm1301_vm14 = vcmp.eq.s32.totalorder %v1169_v61, %v3556_v42  ;;  %2630 = vmatpush3.bf16.msk.msra.mxu1 %vm4118_vm11, %v3182_v60  ;;  %vm4202_vm12 = vmpackc.low %vm1269_vm2, %vm1268_vm7 }
 0x17e   : > { %v1170_v54 = vadd.s32 432, %v3519_v19  ;;  %v1171_v34 = vadd.s32 440, %v3519_v19  ;;  %2600 = vmatprep.subr.msk.bf16.mxu0 %vm4136_vm4, %v3182_v60  ;;  %vm1252_vm0 = vcmp.eq.s32.totalorder %v1120_v17, %v3556_v42  ;;  %vm1253_vm5 = vcmp.eq.s32.totalorder %v1121_v18, %v3556_v42  ;;  %2632 = vmatprep.subr.msk.bf16.mxu1 %vm4151_vm6, %v3182_v60  ;;  %vm4214_vm13 = vmpackc.low %vm1301_vm14, %vm1300_vm8 }
 0x17f   : > { %v1122_v2 = vadd.s32 48, %v3519_v19  ;;  %v1123_v7 = vadd.s32 56, %v3519_v19  ;;  %vm1284_vm11 = vcmp.eq.s32.totalorder %v1152_v43, %v3556_v42  ;;  %vm1285_vm1 = vcmp.eq.s32.totalorder %v1153_v58, %v3556_v42  ;;  %vm4229_vm3 = vmpackc.low %vm1253_vm5, %vm1252_vm0 }
 0x180   : > { %v1154_v47 = vadd.s32 304, %v3519_v19  ;;  %v1155_v38 = vadd.s32 312, %v3519_v19  ;;  %vm1270_vm4 = vcmp.eq.s32.totalorder %v1138_v40, %v3556_v42  ;;  %vm1271_vm15 = vcmp.eq.s32.totalorder %v1139_v46, %v3556_v42  ;;  %vm4247_vm2 = vmpackc.low %vm1285_vm1, %vm1284_vm11 }
 0x181   : > { %v1140_v24 = vadd.s32 192, %v3519_v19  ;;  %v1141_v4 = vadd.s32 200, %v3519_v19  ;;  %2602 = vmatpush3.bf16.msk.msra.mxu0 %vm4169_vm9, %v3182_v60  ;;  %vm1302_vm6 = vcmp.eq.s32.totalorder %v1170_v54, %v3556_v42  ;;  %vm1303_vm7 = vcmp.eq.s32.totalorder %v1171_v34, %v3556_v42  ;;  %2634 = vmatpush3.bf16.msk.msra.mxu1 %vm4187_vm10, %v3182_v60  ;;  %vm2607_vm14 = vmpackc.low %vm1271_vm15, %vm1270_vm4 }
 0x182   : > { %v1172_v59 = vadd.s32 448, %v3519_v19  ;;  %v1173_v57 = vadd.s32 456, %v3519_v19  ;;  %2604 = vmatprep.subr.msk.bf16.mxu0 %vm4202_vm12, %v3182_v60  ;;  %vm1254_vm9 = vcmp.eq.s32.totalorder %v1122_v2, %v3556_v42  ;;  %vm1255_vm8 = vcmp.eq.s32.totalorder %v1123_v7, %v3556_v42  ;;  %2636 = vmatprep.subr.msk.bf16.mxu1 %vm4214_vm13, %v3182_v60  ;;  %vm2639_vm5 = vmpackc.low %vm1303_vm7, %vm1302_vm6 }
 0x183   : > { %vm1286_vm10 = vcmp.eq.s32.totalorder %v1154_v47, %v3556_v42  ;;  %vm1287_vm0 = vcmp.eq.s32.totalorder %v1155_v38, %v3556_v42  ;;  %v1124_v44 = vadd.s32 64, %v3519_v19  ;;  %v1125_v55 = vadd.s32 72, %v3519_v19  ;;  %vm2609_vm1 = vmpackc.low %vm1255_vm8, %vm1254_vm9 }
 0x184   : > { %vm1272_vm12 = vcmp.eq.s32.totalorder %v1140_v24, %v3556_v42  ;;  %vm1273_vm11 = vcmp.eq.s32.totalorder %v1141_v4, %v3556_v42  ;;  %v1156_v52 = vadd.s32 320, %v3519_v19  ;;  %v1157_v31 = vadd.s32 328, %v3519_v19  ;;  %vm2641_vm15 = vmpackc.low %vm1287_vm0, %vm1286_vm10 }
 0x185   : > { %2606 = vmatpush3.bf16.msk.msra.mxu0 %vm4229_vm3, %v3182_v60  ;;  %vm1304_vm13 = vcmp.eq.s32.totalorder %v1172_v59, %v3556_v42  ;;  %vm1305_vm4 = vcmp.eq.s32.totalorder %v1173_v57, %v3556_v42  ;;  %2638 = vmatpush3.bf16.msk.msra.mxu1 %vm4247_vm2, %v3182_v60  ;;  %vm2611_vm6 = vmpackc.low %vm1273_vm11, %vm1272_vm12  ;;  %vm1256_vm7 = vcmp.eq.s32.totalorder %v1124_v44, %v3556_v42  ;;  %v1142_v62 = vadd.s32 208, %v3519_v19 }
 0x186   : > { %2608 = vmatprep.subr.msk.bf16.mxu0 %vm2607_vm14, %v3182_v60  ;;  %2640 = vmatprep.subr.msk.bf16.mxu1 %vm2639_vm5, %v3182_v60  ;;  %vm1257_vm3 = vcmp.eq.s32.totalorder %v1125_v55, %v3556_v42  ;;  %vm2643_vm9 = vmpackc.low %vm1305_vm4, %vm1304_vm13  ;;  %vm1288_vm8 = vcmp.eq.s32.totalorder %v1156_v52, %v3556_v42  ;;  %vm1289_vm2 = vcmp.eq.s32.totalorder %v1157_v31, %v3556_v42  ;;  %v1143_v1 = vadd.s32 216, %v3519_v19 }
 0x187   : > { %vm2613_vm14 = vmpackc.low %vm1257_vm3, %vm1256_vm7  ;;  %v1126_v35 = vadd.s32 80, %v3519_v19  ;;  %v1127_v53 = vadd.s32 88, %v3519_v19  ;;  %v1174_v16 = vadd.s32 464, %v3519_v19  ;;  %v1175_v36 = vadd.s32 472, %v3519_v19 }
 0x188   : > { %vm2645_vm10 = vmpackc.low %vm1289_vm2, %vm1288_vm8  ;;  %vm1274_vm0 = vcmp.eq.s32.totalorder %v1142_v62, %v3556_v42  ;;  %vm1275_vm5 = vcmp.eq.s32.totalorder %v1143_v1, %v3556_v42  ;;  %v1158_v45 = vadd.s32 336, %v3519_v19  ;;  %v1159_v12 = vadd.s32 344, %v3519_v19 }
 0x189   : > { %2610 = vmatpush3.bf16.msk.msra.mxu0 %vm2609_vm1, %v3182_v60  ;;  %2642 = vmatpush3.bf16.msk.msra.mxu1 %vm2641_vm15, %v3182_v60  ;;  %vm2615_vm12 = vmpackc.low %vm1275_vm5, %vm1274_vm0  ;;  %vm1258_vm11 = vcmp.eq.s32.totalorder %v1126_v35, %v3556_v42  ;;  %vm1259_vm1 = vcmp.eq.s32.totalorder %v1127_v53, %v3556_v42  ;;  %vm1306_vm13 = vcmp.eq.s32.totalorder %v1174_v16, %v3556_v42  ;;  %v1144_v50 = vadd.s32 224, %v3519_v19 }
 0x18a   : > { %2612 = vmatprep.subr.msk.bf16.mxu0 %vm2611_vm6, %v3182_v60  ;;  %2644 = vmatprep.subr.msk.bf16.mxu1 %vm2643_vm9, %v3182_v60  ;;  %vm1307_vm4 = vcmp.eq.s32.totalorder %v1175_v36, %v3556_v42  ;;  %vm2617_vm15 = vmpackc.low %vm1259_vm1, %vm1258_vm11  ;;  %vm1290_vm6 = vcmp.eq.s32.totalorder %v1158_v45, %v3556_v42  ;;  %vm1291_vm7 = vcmp.eq.s32.totalorder %v1159_v12, %v3556_v42  ;;  %v1145_v8 = vadd.s32 232, %v3519_v19 }
 0x18b   : > { %vm2647_vm3 = vmpackc.low %vm1307_vm4, %vm1306_vm13  ;;  %v1128_v30 = vadd.s32 96, %v3519_v19  ;;  %v1129_v37 = vadd.s32 104, %v3519_v19  ;;  %v1176_v29 = vadd.s32 480, %v3519_v19  ;;  %v1177_v56 = vadd.s32 488, %v3519_v19 }
 0x18c   : > { %vm2649_vm9 = vmpackc.low %vm1291_vm7, %vm1290_vm6  ;;  %vm1276_vm8 = vcmp.eq.s32.totalorder %v1144_v50, %v3556_v42  ;;  %vm1277_vm2 = vcmp.eq.s32.totalorder %v1145_v8, %v3556_v42  ;;  %v1160_v10 = vadd.s32 352, %v3519_v19  ;;  %v1161_v48 = vadd.s32 360, %v3519_v19 }
 0x18d   : > { %2614 = vmatpush3.bf16.msk.msra.mxu0 %vm2613_vm14, %v3182_v60  ;;  %2646 = vmatpush3.bf16.msk.msra.mxu1 %vm2645_vm10, %v3182_v60  ;;  %vm2619_vm14 = vmpackc.low %vm1277_vm2, %vm1276_vm8  ;;  %vm1260_vm10 = vcmp.eq.s32.totalorder %v1128_v30, %v3556_v42  ;;  %vm1261_vm0 = vcmp.eq.s32.totalorder %v1129_v37, %v3556_v42  ;;  %vm1308_vm5 = vcmp.eq.s32.totalorder %v1176_v29, %v3556_v42  ;;  %v1146_v63 = vadd.s32 240, %v3519_v19 }
 0x18e   : > { %2616 = vmatprep.subr.msk.bf16.mxu0 %vm2615_vm12, %v3182_v60  ;;  %2648 = vmatprep.subr.msk.bf16.mxu1 %vm2647_vm3, %v3182_v60  ;;  %vm1309_vm12 = vcmp.eq.s32.totalorder %v1177_v56, %v3556_v42  ;;  %vm2621_vm11 = vmpackc.low %vm1261_vm0, %vm1260_vm10  ;;  %vm1292_vm1 = vcmp.eq.s32.totalorder %v1160_v10, %v3556_v42  ;;  %vm1293_vm13 = vcmp.eq.s32.totalorder %v1161_v48, %v3556_v42  ;;  %v1147_v9 = vadd.s32 248, %v3519_v19 }
 0x18f   : > { %vm2651_vm4 = vmpackc.low %vm1309_vm12, %vm1308_vm5  ;;  %v1130_v0 = vadd.s32 112, %v3519_v19  ;;  %v1131_v13 = vadd.s32 120, %v3519_v19  ;;  %v1178_v51 = vadd.s32 496, %v3519_v19  ;;  %v1179_v28 = vadd.s32 504, %v3519_v19 }
 0x190   : > { %vm1278_vm6 = vcmp.eq.s32.totalorder %v1146_v63, %v3556_v42  ;;  %vm1279_vm7 = vcmp.eq.s32.totalorder %v1147_v9, %v3556_v42  ;;  %v1162_v20 = vadd.s32 368, %v3519_v19  ;;  %v1163_v21 = vadd.s32 376, %v3519_v19 }
 0x191   : > { %2618 = vmatpush3.bf16.msk.msra.mxu0 %vm2617_vm15, %v3182_v60  ;;  %2650 = vmatpush3.bf16.msk.msra.mxu1 %vm2649_vm9, %v3182_v60  ;;  %vm2653_vm15 = vmpackc.low %vm1293_vm13, %vm1292_vm1  ;;  %vm1262_vm9 = vcmp.eq.s32.totalorder %v1130_v0, %v3556_v42  ;;  %vm1263_vm8 = vcmp.eq.s32.totalorder %v1131_v13, %v3556_v42  ;;  %vm1310_vm2 = vcmp.eq.s32.totalorder %v1178_v51, %v3556_v42  ;;  %v1196_v14 = vadd.s32 640, %v3519_v19 }
 0x192   : > { %2620 = vmatprep.subr.msk.bf16.mxu0 %vm2619_vm14, %v3182_v60  ;;  %2652 = vmatprep.subr.msk.bf16.mxu1 %vm2651_vm4, %v3182_v60  ;;  %vm2623_vm3 = vmpackc.low %vm1279_vm7, %vm1278_vm6  ;;  %vm1311_vm14 = vcmp.eq.s32.totalorder %v1179_v28, %v3556_v42  ;;  %vm1294_vm0 = vcmp.eq.s32.totalorder %v1162_v20, %v3556_v42  ;;  %vm1295_vm5 = vcmp.eq.s32.totalorder %v1163_v21, %v3556_v42  ;;  %v1197_v49 = vadd.s32 648, %v3519_v19 }
 0x193   : > { %vm2625_vm10 = vmpackc.low %vm1263_vm8, %vm1262_vm9  ;;  %v1228_v33 = vadd.s32 896, %v3519_v19  ;;  %v1229_v25 = vadd.s32 904, %v3519_v19  ;;  %vm1328_vm1 = vcmp.eq.s32.totalorder %v1196_v14, %v3556_v42  ;;  %v1180_v17 = vadd.s32 512, %v3519_v19 }
 0x194   : > { %vm2655_vm12 = vmpackc.low %vm1311_vm14, %vm1310_vm2  ;;  %vm1329_vm13 = vcmp.eq.s32.totalorder %v1197_v49, %v3556_v42  ;;  %v1181_v18 = vadd.s32 520, %v3519_v19  ;;  %v1212_v39 = vadd.s32 768, %v3519_v19  ;;  %v1213_v43 = vadd.s32 776, %v3519_v19 }
 0x195   : > { %2622 = vmatpush3.bf16.msk.msra.mxu0 %vm2621_vm11, %v3182_v60  ;;  %2654 = vmatpush3.bf16.msk.msra.mxu1 %vm2653_vm15, %v3182_v60  ;;  %vm2657_vm11 = vmpackc.low %vm1295_vm5, %vm1294_vm0  ;;  %vm1360_vm15 = vcmp.eq.s32.totalorder %v1228_v33, %v3556_v42  ;;  %vm1361_vm6 = vcmp.eq.s32.totalorder %v1229_v25, %v3556_v42  ;;  %v1198_v58 = vadd.s32 656, %v3519_v19  ;;  %v1199_v32 = vadd.s32 664, %v3519_v19 }
 0x196   : > { %2624 = vmatprep.subr.msk.bf16.mxu0 %vm2623_vm3, %v3182_v60  ;;  %2656 = vmatprep.subr.msk.bf16.mxu1 %vm2655_vm12, %v3182_v60  ;;  %vm2659_vm4 = vmpackc.low %vm1329_vm13, %vm1328_vm1  ;;  %v1182_v40 = vadd.s32 528, %v3519_v19  ;;  %v1183_v46 = vadd.s32 536, %v3519_v19  ;;  %vm1312_vm3 = vcmp.eq.s32.totalorder %v1180_v17, %v3556_v42  ;;  %v1230_v22 = vadd.s32 912, %v3519_v19 }
 0x197   : > { %vm2691_vm7 = vmpackc.low %vm1361_vm6, %vm1360_vm15  ;;  %v1231_v54 = vadd.s32 920, %v3519_v19  ;;  %v4374_v34 = vadd.s32 784, %v3519_v19  ;;  %vm1313_vm9 = vcmp.eq.s32.totalorder %v1181_v18, %v3556_v42  ;;  %vm1344_vm8 = vcmp.eq.s32.totalorder %v1212_v39, %v3556_v42 }
 0x198   : > { %vm1345_vm2 = vcmp.eq.s32.totalorder %v1213_v43, %v3556_v42  ;;  %v1215_v5 = vadd.s32 792, %v3519_v19  ;;  %vm1330_vm14 = vcmp.eq.s32.totalorder %v1198_v58, %v3556_v42  ;;  %vm1314_vm0 = vcmp.eq.s32.totalorder %v1182_v40, %v3556_v42  ;;  %vm4394_vm13 = vmpackc.low %vm1313_vm9, %vm1312_vm3 }
 0x199   : > { %2626 = vmatpush3.bf16.msk.msra.mxu0 %vm2625_vm10, %v3182_v60  ;;  %2658 = vmatpush3.bf16.msk.msra.mxu1 %vm2657_vm11, %v3182_v60  ;;  %vm1331_vm10 = vcmp.eq.s32.totalorder %v1199_v32, %v3556_v42  ;;  %vm1315_vm5 = vcmp.eq.s32.totalorder %v1183_v46, %v3556_v42  ;;  %v1200_v47 = vadd.s32 672, %v3519_v19  ;;  %v1201_v38 = vadd.s32 680, %v3519_v19  ;;  %vm4416_vm6 = vmpackc.low %vm1345_vm2, %vm1344_vm8 }
 0x19a   : > { %2660 = vmatprep.subr.msk.bf16.mxu0 %vm2659_vm4, %v3182_v60  ;;  %2692 = vmatprep.subr.msk.bf16.mxu1 %vm2691_vm7, %v3182_v60  ;;  %vm1362_vm12 = vcmp.eq.s32.totalorder %v1230_v22, %v3556_v42  ;;  %vm1363_vm11 = vcmp.eq.s32.totalorder %v1231_v54, %v3556_v42  ;;  %vm1346_vm1 = vcmp.eq.s32.totalorder %v4374_v34, %v3556_v42  ;;  %v1232_v59 = vadd.s32 928, %v3519_v19  ;;  %vm4405_vm15 = vmpackc.low %vm1331_vm10, %vm1330_vm14 }
 0x19b   : > { %vm1347_vm4 = vcmp.eq.s32.totalorder %v1215_v5, %v3556_v42  ;;  %v1233_v57 = vadd.s32 936, %v3519_v19  ;;  %v1184_v52 = vadd.s32 544, %v3519_v19  ;;  %v1185_v31 = vadd.s32 552, %v3519_v19  ;;  %vm4431_vm9 = vmpackc.low %vm1363_vm11, %vm1362_vm12 }
 0x19c   : > { %v1216_v62 = vadd.s32 800, %v3519_v19  ;;  %vm1332_vm7 = vcmp.eq.s32.totalorder %v1200_v47, %v3556_v42  ;;  %vm1333_vm3 = vcmp.eq.s32.totalorder %v1201_v38, %v3556_v42  ;;  %v1202_v53 = vadd.s32 688, %v3519_v19  ;;  %vm4450_vm8 = vmpackc.low %vm1315_vm5, %vm1314_vm0 }
 0x19d   : > { %v1203_v16 = vadd.s32 696, %v3519_v19  ;;  %v1217_v12 = vadd.s32 808, %v3519_v19  ;;  %v1186_v50 = vadd.s32 560, %v3519_v19  ;;  %v1187_v8 = vadd.s32 568, %v3519_v19  ;;  %vm4465_vm10 = vmpackc.low %vm1333_vm3, %vm1332_vm7 }
 0x19e   : > { %vm1364_vm2 = vcmp.eq.s32.totalorder %v1232_v59, %v3556_v42  ;;  %vm1365_vm14 = vcmp.eq.s32.totalorder %v1233_v57, %v3556_v42  ;;  %v1234_v37 = vadd.s32 944, %v3519_v19  ;;  %v1235_v29 = vadd.s32 952, %v3519_v19  ;;  %vm4482_vm11 = vmpackc.low %vm1347_vm4, %vm1346_vm1 }
 0x19f   : > { %vm1316_vm0 = vcmp.eq.s32.totalorder %v1184_v52, %v3556_v42  ;;  %vm1317_vm5 = vcmp.eq.s32.totalorder %v1185_v31, %v3556_v42  ;;  %vm1348_vm12 = vcmp.eq.s32.totalorder %v1216_v62, %v3556_v42  ;;  %v1218_v10 = vadd.s32 816, %v3519_v19  ;;  %vm4499_vm1 = vmpackc.low %vm1365_vm14, %vm1364_vm2 }
 0x1a0   : > { %v1204_v63 = vadd.s32 704, %v3519_v19  ;;  %v1205_v9 = vadd.s32 712, %v3519_v19  ;;  %vm1349_vm4 = vcmp.eq.s32.totalorder %v1217_v12, %v3556_v42  ;;  %vm1319_vm7 = vcmp.eq.s32.totalorder %v1187_v8, %v3556_v42  ;;  %vm4514_vm3 = vmpackc.low %vm1317_vm5, %vm1316_vm0 }
 0x1a1   : > { %v1219_v51 = vadd.s32 824, %v3519_v19  ;;  %v1236_v21 = vadd.s32 960, %v3519_v19  ;;  %v1237_v14 = vadd.s32 968, %v3519_v19  ;;  %vm1350_vm14 = vcmp.eq.s32.totalorder %v1218_v10, %v3556_v42 }
 0x1a2   : > { %v1188_v25 = vadd.s32 576, %v3519_v19  ;;  %v1189_v27 = vadd.s32 584, %v3519_v19  ;;  %vm1336_vm0 = vcmp.eq.s32.totalorder %v1204_v63, %v3556_v42  ;;  %vm1337_vm5 = vcmp.eq.s32.totalorder %v1205_v9, %v3556_v42 }
 0x1a3   : > { %v1207_v17 = vadd.s32 728, %v3519_v19  ;;  %v1220_v39 = vadd.s32 832, %v3519_v19  ;;  %v1221_v43 = vadd.s32 840, %v3519_v19  ;;  %v1238_v40 = vadd.s32 976, %v3519_v19 }
 0x1a4   : > { %v1239_v46 = vadd.s32 984, %v3519_v19  ;;  %v1190_v54 = vadd.s32 592, %v3519_v19  ;;  %v1191_v34 = vadd.s32 600, %v3519_v19  ;;  %v1222_v47 = vadd.s32 848, %v3519_v19 }
 0x1a5   : > { %v1223_v38 = vadd.s32 856, %v3519_v19  ;;  %v1192_v59 = vadd.s32 608, %v3519_v19  ;;  %v1193_v57 = vadd.s32 616, %v3519_v19  ;;  %v1211_v55 = vadd.s32 760, %v3519_v19 }
 0x1a6   : > { %v1224_v31 = vadd.s32 864, %v3519_v19  ;;  %v1225_v62 = vadd.s32 872, %v3519_v19  ;;  %v1243_v35 = vadd.s32 1016, %v3519_v19  ;;  %v1227_v45 = vadd.s32 888, %v3519_v19 }
 0x246   : > { %v865_v15 = vpop.f32.mrb[0].mxu0 }
 0x247   : > { %2871 = vtanh.f32 %v865_v15  ;;  %v867_v61 = vpop.f32.mrb[1].mxu0  ;;  %v936_v23 = vpop.f32.mrb[0].mxu1 }
 0x248   : > { %2873 = vtanh.f32 %v867_v61  ;;  %v938_v6 = vpop.f32.mrb[1].mxu1 }
 0x249   : > { %2875 = vtanh.f32 %v936_v23 }
 0x24a   : > { %2877 = vtanh.f32 %v938_v6  ;;  %v1206_v6 = vadd.s32 720, %v3519_v19 }
 0x24f   : > { %v1007_v2 = vpop.f32.mrb[2].mxu0  ;;  %v1078_v26 = vpop.f32.mrb[2].mxu1 }
 0x250   : > { %2879 = vtanh.f32 %v1007_v2  ;;  %v1009_v7 = vpop.f32.mrb[3].mxu0  ;;  %v1080_v41 = vpop.f32.mrb[3].mxu1  ;;  %v1208_v2 = vadd.s32 736, %v3519_v19 }
 0x251   : > { %2881 = vtanh.f32 %v1009_v7  ;;  %v2872_v24 = vpop.eup %2871  ;;  %v1209_v7 = vadd.s32 744, %v3519_v19 }
 0x252   : > { %2883 = vtanh.f32 %v1078_v26  ;;  %v2874_v4 = vpop.eup %2873 }
 0x253   : > { %2885 = vtanh.f32 %v1080_v41  ;;  %v2876_v11 = vpop.eup %2875  ;;  %v1099_v44 = vcombine.low %v2872_v24, %v2874_v4  ;;  %1696 = vmatprep.mubr.f32.mxu0 %v2874_v4  ;;  %v1241_v4 = vadd.s32 1000, %v3519_v19 }
 0x254   : > { %v2878_v1 = vpop.eup %2877  ;;  %1697 = vmatmul.mubr.f32.vlgmr.msra.gmra.mrb[4].mxu0 %v2872_v24  ;;  %v1240_v24 = vadd.s32 992, %v3519_v19 }
 0x255   : > { %v1100_v36 = vcombine.low %v2876_v11, %v2878_v1  ;;  %1766 = vmatprep.mubr.f32.mxu1 %v2878_v1  ;;  %2662 = vmatpush3.bf16.msk.msra.mxu0 %vm4394_vm13, %v3182_v60  ;;  %1107 = vst [vmem:[%s4440_s16] sm:$0x77] %v1099_v44  ;;  %vm1334_vm13 = vcmp.eq.s32.totalorder %v1202_v53, %v3556_v42  ;;  %v1210_v44 = vadd.s32 752, %v3519_v19  ;;  %v1242_v1 = vadd.s32 1008, %v3519_v19 }
 0x256   : > { %1767 = vmatmul.mubr.f32.vlgmr.msra.gmra.mrb[4].mxu1 %v2876_v11  ;;  %2664 = vmatprep.subr.msk.bf16.mxu0 %vm4405_vm15, %v3182_v60  ;;  %vm1335_vm15 = vcmp.eq.s32.totalorder %v1203_v16, %v3556_v42  ;;  %v1194_v53 = vadd.s32 624, %v3519_v19  ;;  %v1195_v16 = vadd.s32 632, %v3519_v19 }
 0x257   : > { %2694 = vmatpush3.bf16.msk.msra.mxu1 %vm4416_vm6, %v3182_v60  ;;  %1108 = vst [vmem:[%s4440_s16 + $0x8] sm:$0x77] %v1100_v36  ;;  %vm1318_vm6 = vcmp.eq.s32.totalorder %v1186_v50, %v3556_v42  ;;  %vm4531_vm2 = vmpackc.low %vm1335_vm15, %vm1334_vm13  ;;  %vm1368_vm15 = vcmp.eq.s32.totalorder %v1236_v21, %v3556_v42  ;;  %v1226_v36 = vadd.s32 880, %v3519_v19 }
 0x258   : > { %2696 = vmatprep.subr.msk.bf16.mxu1 %vm4431_vm9, %v3182_v60  ;;  %vm1366_vm9 = vcmp.eq.s32.totalorder %v1234_v37, %v3556_v42  ;;  %vm4577_vm13 = vmpackc.low %vm1319_vm7, %vm1318_vm6  ;;  %vm1320_vm6 = vcmp.eq.s32.totalorder %v1188_v25, %v3556_v42  ;;  %vm1321_vm7 = vcmp.eq.s32.totalorder %v1189_v27, %v3556_v42 }
 0x259   : > { %2666 = vmatpush3.bf16.msk.msra.mxu0 %vm4450_vm8, %v3182_v60  ;;  %vm1367_vm8 = vcmp.eq.s32.totalorder %v1235_v29, %v3556_v42 }
 0x25a   : > { %v4490_v0 = vpop.eup %2879  ;;  %2668 = vmatprep.subr.msk.bf16.mxu0 %vm4465_vm10, %v3182_v60  ;;  %vm4546_vm10 = vmpackc.low %vm1349_vm4, %vm1348_vm12 }
 0x25b   : > { %v2882_v28 = vpop.eup %2881  ;;  %2698 = vmatpush3.bf16.msk.msra.mxu1 %vm4482_vm11, %v3182_v60  ;;  %vm4561_vm12 = vmpackc.low %vm1367_vm8, %vm1366_vm9  ;;  %vm1351_vm11 = vcmp.eq.s32.totalorder %v1219_v51, %v3556_v42  ;;  %vm1338_vm9 = vcmp.eq.s32.totalorder %v1206_v6, %v3556_v42  ;;  %vm1339_vm8 = vcmp.eq.s32.totalorder %v1207_v17, %v3556_v42 }
 0x25c   : > { %v4522_v49 = vpop.eup %2883  ;;  %v1101_v15 = vcombine.low %v4490_v0, %v2882_v28  ;;  %1836 = vmatprep.mubr.f32.mxu0 %v2882_v28  ;;  %2700 = vmatprep.subr.msk.bf16.mxu1 %vm4499_vm1, %v3182_v60  ;;  %vm1369_vm1 = vcmp.eq.s32.totalorder %v1237_v14, %v3556_v42  ;;  %vm4592_vm4 = vmpackc.low %vm1337_vm5, %vm1336_vm0  ;;  %vm1370_vm5 = vcmp.eq.s32.totalorder %v1238_v40, %v3556_v42 }
 0x25d   : > { %v2886_v61 = vpop.eup %2885  ;;  %2670 = vmatpush3.bf16.msk.msra.mxu0 %vm4514_vm3, %v3182_v60  ;;  %vm4608_vm3 = vmpackc.low %vm1351_vm11, %vm1350_vm14  ;;  %vm1352_vm14 = vcmp.eq.s32.totalorder %v1220_v39, %v3556_v42 }
 0x25e   : > { %v1102_v58 = vcombine.low %v4522_v49, %v2886_v61  ;;  %1906 = vmatprep.mubr.f32.mxu1 %v2886_v61  ;;  %1109 = vst [vmem:[%s4440_s16 + $0x10] sm:$0x77] %v1101_v15  ;;  %2672 = vmatprep.subr.msk.bf16.mxu0 %vm4531_vm2, %v3182_v60  ;;  %vm4623_vm2 = vmpackc.low %vm1369_vm1, %vm1368_vm15  ;;  %vm1323_vm15 = vcmp.eq.s32.totalorder %v1191_v34, %v3556_v42 }
 0x25f   : > { %2702 = vmatpush3.bf16.msk.msra.mxu1 %vm4546_vm10, %v3182_v60  ;;  %vm1353_vm10 = vcmp.eq.s32.totalorder %v1221_v43, %v3556_v42  ;;  %vm4638_vm0 = vmpackc.low %vm1321_vm7, %vm1320_vm6  ;;  %vm1341_vm6 = vcmp.eq.s32.totalorder %v1209_v7, %v3556_v42 }
 0x260   : > { %1110 = vst [vmem:[%s4440_s16 + $0x18] sm:$0x77] %v1102_v58  ;;  %2704 = vmatprep.subr.msk.bf16.mxu1 %vm4561_vm12, %v3182_v60  ;;  %vm1371_vm12 = vcmp.eq.s32.totalorder %v1239_v46, %v3556_v42  ;;  %vm4653_vm11 = vmpackc.low %vm1339_vm8, %vm1338_vm9  ;;  %vm1355_vm9 = vcmp.eq.s32.totalorder %v1223_v38, %v3556_v42 }
 0x261   : > { %2674 = vmatpush3.bf16.msk.msra.mxu0 %vm4577_vm13, %v3182_v60  ;;  %vm1322_vm13 = vcmp.eq.s32.totalorder %v1190_v54, %v3556_v42  ;;  %vm4668_vm1 = vmpackc.low %vm1353_vm10, %vm1352_vm14  ;;  %vm1373_vm14 = vcmp.eq.s32.totalorder %v1241_v4, %v3556_v42 }
 0x262   : > { %2676 = vmatprep.subr.msk.bf16.mxu0 %vm4592_vm4, %v3182_v60  ;;  %vm1340_vm4 = vcmp.eq.s32.totalorder %v1208_v2, %v3556_v42  ;;  %vm4683_vm7 = vmpackc.low %vm1371_vm12, %vm1370_vm5  ;;  %vm1325_vm5 = vcmp.eq.s32.totalorder %v1193_v57, %v3556_v42 }
 0x263   : > { %2706 = vmatpush3.bf16.msk.msra.mxu1 %vm4608_vm3, %v3182_v60  ;;  %vm1354_vm3 = vcmp.eq.s32.totalorder %v1222_v47, %v3556_v42  ;;  %vm2681_vm8 = vmpackc.low %vm1323_vm15, %vm1322_vm13  ;;  %vm1343_vm13 = vcmp.eq.s32.totalorder %v1211_v55, %v3556_v42 }
 0x264   : > { %2708 = vmatprep.subr.msk.bf16.mxu1 %vm4623_vm2, %v3182_v60  ;;  %vm1372_vm2 = vcmp.eq.s32.totalorder %v1240_v24, %v3556_v42  ;;  %vm2683_vm10 = vmpackc.low %vm1341_vm6, %vm1340_vm4  ;;  %vm1357_vm4 = vcmp.eq.s32.totalorder %v1225_v62, %v3556_v42 }
 0x265   : > { %2678 = vmatpush3.bf16.msk.msra.mxu0 %vm4638_vm0, %v3182_v60  ;;  %vm1324_vm0 = vcmp.eq.s32.totalorder %v1192_v59, %v3556_v42  ;;  %vm2713_vm12 = vmpackc.low %vm1355_vm9, %vm1354_vm3  ;;  %vm1375_vm3 = vcmp.eq.s32.totalorder %v1243_v35, %v3556_v42 }
 0x266   : > { %2680 = vmatprep.subr.msk.bf16.mxu0 %vm4653_vm11, %v3182_v60  ;;  %vm1342_vm11 = vcmp.eq.s32.totalorder %v1210_v44, %v3556_v42  ;;  %vm2715_vm15 = vmpackc.low %vm1373_vm14, %vm1372_vm2  ;;  %vm1327_vm2 = vcmp.eq.s32.totalorder %v1195_v16, %v3556_v42 }
 0x267   : > { %2710 = vmatpush3.bf16.msk.msra.mxu1 %vm4668_vm1, %v3182_v60  ;;  %vm1356_vm1 = vcmp.eq.s32.totalorder %v1224_v31, %v3556_v42  ;;  %vm2685_vm6 = vmpackc.low %vm1325_vm5, %vm1324_vm0  ;;  %vm1358_vm0 = vcmp.eq.s32.totalorder %v1226_v36, %v3556_v42  ;;  %vm1359_vm5 = vcmp.eq.s32.totalorder %v1227_v45, %v3556_v42 }
 0x268   : > { %2712 = vmatprep.subr.msk.bf16.mxu1 %vm4683_vm7, %v3182_v60  ;;  %vm1374_vm7 = vcmp.eq.s32.totalorder %v1242_v1, %v3556_v42  ;;  %vm2687_vm9 = vmpackc.low %vm1343_vm13, %vm1342_vm11 }
 0x269   : > { %2682 = vmatpush3.bf16.msk.msra.mxu0 %vm2681_vm8, %v3182_v60  ;;  %vm1326_vm8 = vcmp.eq.s32.totalorder %v1194_v53, %v3556_v42  ;;  %vm2717_vm14 = vmpackc.low %vm1357_vm4, %vm1356_vm1 }
 0x26a   : > { %2684 = vmatprep.subr.msk.bf16.mxu0 %vm2683_vm10, %v3182_v60  ;;  %vm2719_vm10 = vmpackc.low %vm1375_vm3, %vm1374_vm7 }
 0x26b   : > { %2714 = vmatpush3.bf16.msk.msra.mxu1 %vm2713_vm12, %v3182_v60  ;;  %vm2689_vm12 = vmpackc.low %vm1327_vm2, %vm1326_vm8 }
 0x26c   : > { %2716 = vmatprep.subr.msk.bf16.mxu1 %vm2715_vm15, %v3182_v60  ;;  %vm2721_vm11 = vmpackc.low %vm1359_vm5, %vm1358_vm0 }
 0x26d   : > { %2686 = vmatpush3.bf16.msk.msra.mxu0 %vm2685_vm6, %v3182_v60 }
 0x26e   : > { %2688 = vmatprep.subr.msk.bf16.mxu0 %vm2687_vm9, %v3182_v60 }
 0x26f   : > { %2718 = vmatpush3.bf16.msk.msra.mxu1 %vm2717_vm14, %v3182_v60 }
 0x270   : > { %2720 = vmatprep.subr.msk.bf16.mxu1 %vm2719_vm10, %v3182_v60 }
 0x271   : > { %2690 = vmatpush3.bf16.msk.msra.mxu0 %vm2689_vm12, %v3182_v60 }
 0x273   : > { %2722 = vmatpush3.bf16.msk.msra.mxu1 %vm2721_vm11, %v3182_v60 }
 0x274   : > { %1837 = vmatmul.mubr.f32.vlgmr.msra.gmra.mrb[6].mxu0 %v4490_v0 }
 0x276   : > { %1907 = vmatmul.mubr.f32.vlgmr.msra.gmra.mrb[6].mxu1 %v4522_v49 }
 0x277   : > { %3072 = shalt.err (!%p3069_p7)
}
 0x278   : > { %s3073_s3 = scalar_lea.hbm %s4752_s22, 512  ;;  %s3077_s8 = scalar_lea.hbm %s4828_s6, 1024 }
 0x279   : > { %p3074_p0 = scmp.ne.s32.totalorder %s4752_s22, %s3073_s3  ;;  %p3078_p9 = scmp.lt.u32.totalorder %s4752_s22, %s4828_s6 }
 0x27a   : > { %p3079_p10 = scmp.lt.u32.totalorder %s3077_s8, %s3073_s3  ;;  %p3081_p12 = scmp.lt.u32.totalorder %s3073_s3, %s4752_s22 }
 0x27b   : > { %p3075_p4 = pnand %p3074_p0, %p5003_p8 }
 0x27c   : > { %p3080_p11 = por %p3079_p10, %p3078_p9 }
 0x27d   : > { %p3076_p3 = pneg %p3075_p4 }
 0x27e   : > { %p3082_p6 = por %p3081_p12, %p3080_p11 }
 0x280   : > { %p3083_p13 = pnand %p3082_p6, %p3076_p3 }
 0x282   : > { %3086 = shalt.err (!%p3083_p13)
}
 0x283   : > { %2743 = dma.vmem_to_hbm [thread:$0]  (%p5003_p8), %s1941_s17, 512, %s4752_s22, %s1921_s13   ;;  %v1916_v0 = vpop.permute.xlu0 %1915 }
 0x284   : > { %s2136_s23 = sshll.u32 %s3454_s26, 2  ;;  %s2410_s21 = sshll.u32 %s3246_s30, 6 }
 0x285   : > { %s390_s16 = scalar_lea.vmem [#allocation14], %s2136_s23  ;;  %s4778_s22 = scalar_lea.hbm %s4829_s7, %s2410_s21 }
 0x286   : > { %s1953_s9 = sshll.u32 %s390_s16, 4  ;;  %s1926_s17 = scalar_lea.sflag [#allocation15], %s3454_s26  ;;  %s4780_s9 = int_to_ptr.vmem [resolvable:$true] %s1953_s9 }
 0x287   : > { %s3087_s13 = scalar_lea.vmem %s4780_s9, 64  ;;  %s3184_s30 = smov [#allocation14]  }
 0x288   : > { %p3088_p2 = scmp.ne.s32.totalorder %s4780_s9, %s3087_s13  ;;  %s3091_s20 = sshll.u32 %s3184_s30, 4  ;;  %s3092_s20 = int_to_ptr.vmem [resolvable:$false] %s3091_s20 }
 0x289   : > { %s3093_s19 = scalar_lea.vmem %s3092_s20, 128  ;;  %p3094_p7 = scmp.lt.s32.totalorder %s4780_s9, %s3092_s20 }
 0x28a   : > { %p3089_p5 = pnand %p3088_p2, %p5003_p8  ;;  %p3095_p0 = scmp.lt.s32.totalorder %s3093_s19, %s3087_s13 }
 0x28c   : > { %p3090_p1 = pneg %p3089_p5  ;;  %p3096_p4 = por %p3095_p0, %p3094_p7 }
 0x28e   : > { %p3097_p3 = pnand %p3096_p4, %p3090_p1 }
 0x327   : > { %v2447_v19 = vpop.f32.mrb[4].mxu0 }
 0x328   : > { %v2448_v42 = vpop.f32.mrb[5].mxu0 }
 0x329   : > { %v2449_v60 = vadd.f32 %v2448_v42, %v2447_v19  ;;  %v2482_v12 = vpop.f32.mrb[4].mxu1 }
 0x32a   : > { %v2483_v50 = vpop.f32.mrb[5].mxu1 }
 0x32b   : > { %v2484_v8 = vadd.f32 %v2483_v50, %v2482_v12 }
 0x32d   : > { %v1769_v30 = vadd.f32 %v2484_v8, %v2449_v60 }
 0x347   : > { %v2517_v37 = vpop.f32.mrb[6].mxu0 }
 0x348   : > { %v2518_v29 = vpop.f32.mrb[7].mxu0 }
 0x349   : > { %v2519_v56 = vadd.f32 %v2518_v29, %v2517_v37  ;;  %v2552_v10 = vpop.f32.mrb[6].mxu1 }
 0x34a   : > { %v2553_v48 = vpop.f32.mrb[7].mxu1 }
 0x34b   : > { %v1839_v63 = vadd.f32 %v2519_v56, %v1769_v30  ;;  %v2554_v9 = vadd.f32 %v2553_v48, %v2552_v10 }
 0x34d   : > { %v1909_v13 = vadd.f32 %v2554_v9, %v1839_v63 }
 0x34f   : > { %v1918_v51 = vmul.f32 %v1916_v0, %v1909_v13 }
 0x351   : > { %1919 = vst [vmem:[%s390_s16] sm:$0x7] %v1918_v51 }
 0x352   : > { %3100 = shalt.err (!%p3097_p3)
}
 0x353   : > { %s3101_s26 = scalar_lea.hbm %s4778_s22, 64  ;;  %s3105_s3 = scalar_lea.hbm %s4829_s7, 128 }
 0x354   : > { %p3102_p9 = scmp.ne.s32.totalorder %s4778_s22, %s3101_s26  ;;  %p3106_p12 = scmp.lt.u32.totalorder %s4778_s22, %s4829_s7 }
 0x355   : > { %p3107_p6 = scmp.lt.u32.totalorder %s3105_s3, %s3101_s26  ;;  %p3109_p2 = scmp.lt.u32.totalorder %s3101_s26, %s4778_s22 }
 0x356   : > { %p3103_p10 = pnand %p3102_p9, %p5003_p8 }
 0x357   : > { %p3108_p13 = por %p3107_p6, %p3106_p12 }
 0x358   : > { %p3104_p11 = pneg %p3103_p10 }
 0x359   : > { %p3110_p5 = por %p3109_p2, %p3108_p13 }
 0x35b   : > { %p3111_p1 = pnand %p3110_p5, %p3104_p11 }
 0x35d   : > { %3114 = shalt.err (!%p3111_p1)
}
 0x35e   : > { %2744 = dma.vmem_to_hbm [thread:$0]  (%p5003_p8), %s4780_s9, 64, %s4778_s22, %s1926_s17  }
 0x35f PF: > { %s5004_s8 = sld [smem:[#allocation25_spill]]  ;;  %s1965_s12 = sand.u32 1, %s3157_s24  }
 0x360   : > { %p5006_p0 = scmp.ge.s32.totalorder %s3169_s27, 2  ;;  %s1966_s15 = scalar_lea.sflag [#allocation4], %s1965_s12 }
 0x365   : > { %p5005_p7 = scmp.ne.s32.totalorder %s5004_s8, 0 }
 0x367   : > { %p2768_p4 = pnand %p5006_p0, %p5005_p7 }
 0x369   : > { %3148 = dma.done.wait (!%p2768_p4), %s1966_s15, 512  }
 0x36a   : > { %3150 = vsyncadd (!%p2768_p4), %s1966_s15, 4294966784  ;;  %s1975_s23 = scalar_lea.sflag [#allocation15], %s1965_s12 }
 0x36b   : > { %3152 = dma.done.wait (!%p2768_p4), %s1975_s23, 64  }
 0x36c   : > { %3154 = vsyncadd (!%p2768_p4), %s1975_s23, 4294967232  ;;  %s5007_s27 = sld [smem:[#allocation23_spill]]  ;;  %s5008_s29 = sld [smem:[#allocation22_spill]] }
 0x36d   : > { %s5009_s26 = sld [smem:[#allocation24_spill]]  ;;  %s5010_s24 = smov %s3161_s25 }
 0x372   : > { %p27_p8 = scmp.ge.s32.totalorder %s5007_s27, 4   ;;  %s5011_s25 = smov %s5008_s29 }
 0x374   :  { %29 = sbr.rel (!%p27_p8) target bundleno = 13 (0xd), region = 134 }
 0x37b   :  { %1980 = vsyncpa [#allocation3], 1 }
 0x37c   :  { %1982 = vsyncpa [#allocation3 + $0x1], 1 }
 0x37d   :  { %1983 = vsyncpa [#allocation6], 1 }
 0x37e   :  { %1985 = vsyncpa [#allocation6 + $0x1], 1 }
 0x37f   :  { %1986 = vsyncpa [#allocation9], 1 }
 0x380   :  { %1987 = vsyncpa [#allocation12], 1 }
 0x381   :  { %1988 = vsyncpa [#allocation4], 1 }
 0x382   :  { %1990 = vsyncpa [#allocation4 + $0x1], 1 }
 0x383   :  { %1991 = vsyncpa [#allocation15], 1 }
 0x384   :  { %1993 = vsyncpa [#allocation15 + $0x1], 1 }

</bundles_post_ra>
